<compile_context>
chip_gen: v5e
topology: v5e:2x2
jax: 0.10.0
libtpu: 0.0.40
codegen_flags: <defaults>
</compile_context>

<pallas_src>
import functools

import jax
import jax.numpy as jnp
import numpy as np
from jax.experimental import pallas as pl
from jax.experimental.pallas import tpu as pltpu


# ------------------------------ Pallas kernel ------------------------------ #
def _decoder_kernel(*refs, num_stages, bb, th0, wc0, relu_flags):
    """Fully fused decoder for one batch block (bb batch elements in lanes).

    refs layout:
      refs[0]               : z      (bb, feat)                       f32
      refs[1], refs[2]      : fc_w   (feat, feat) bf16,  fc_b (1, feat) f32
      refs[3 + 3*s + 0..2]  : stage s: L_cat (Mo, 3*Mi) bf16,
                                       R_cat (Nin_b, 3*No_b) bf16,
                                       bias  (1, No_b) f32
      refs[-1]              : out    (1, T*H, bb*W*C)                 f32
    """
    out_ref = refs[-1]
    z_ref, fcw_ref, fcb_ref = refs[0], refs[1], refs[2]
    f32, bf16 = jnp.float32, jnp.bfloat16

    # fc + ReLU (fc weight columns pre-permuted to (t, h, w, c) order).
    z = z_ref[...].astype(bf16)                                       # (bb, feat)
    h = jnp.dot(z, fcw_ref[...], preferred_element_type=f32) + fcb_ref[...]
    h = jnp.maximum(h, 0.0)                                           # f32

    # Relayout to the im-matrix: rows=(t,h), cols=(b, w, c) (batch in lanes).
    per_batch = []
    for b in range(bb):
        rows = [h[b:b + 1, r * wc0:(r + 1) * wc0] for r in range(th0)]
        per_batch.append(rows[0] if th0 == 1 else jnp.concatenate(rows, axis=0))
    x = per_batch[0] if bb == 1 else jnp.concatenate(per_batch, axis=1)

    # Transposed-conv stages:  x <- relu( L_cat @ stack_k(x @ R_k) + bias )
    for s in range(num_stages):
        l_ref = refs[3 + 3 * s]          # (Mo, 3*Mi)        bf16
        r_ref = refs[3 + 3 * s + 1]      # (Nin_b, 3*No_b)   bf16
        b_ref = refs[3 + 3 * s + 2]      # (1, No_b)         f32
        no_b = b_ref.shape[1]

        xw = jnp.dot(x.astype(bf16), r_ref[...],
                     preferred_element_type=f32)                      # (Mi, 3*No_b)
        y_stack = jnp.concatenate(
            [xw[:, k * no_b:(k + 1) * no_b] for k in range(3)], axis=0)  # (3*Mi, No_b)
        y = jnp.dot(l_ref[...], y_stack.astype(bf16),
                    preferred_element_type=f32)                       # (Mo, No_b)
        y = y + b_ref[...]
        x = jnp.maximum(y, 0.0) if relu_flags[s] else y

    out_ref[0] = x.astype(out_ref.dtype)


# ---------------------- one-time weight pre-factorization ------------------ #
def prepare_decoder_params(params, *, C, T, H, W, batch_block=1):
    """Offline: build tap-merged (L_cat, R_cat, bias_row) per layer, bf16 weights.

    batch_block (bb) batch elements are stacked into the lane axis, so R_cat is
    pre-expanded to kron(I_bb, R_k) and the bias row is tiled bb times.
    """
    bb = int(batch_block)
    t0, h0, w0 = T // 8, H // 8, W // 8
    feat = 16 * t0 * h0 * w0

    # fc: PyTorch Linear (out, in).  Permute output columns to (t, h, w, c).
    perm = np.empty((feat,), np.int64)
    n = 0
    for t in range(t0):
        for h in range(h0):
            for w in range(w0):
                for c in range(16):
                    perm[n] = ((c * t0 + t) * h0 + h) * w0 + w
                    n += 1
    fc_w = np.asarray(params["fc_w"], np.float32)
    fc_b = np.asarray(params["fc_b"], np.float32)
    fc_wp = fc_w.T[:, perm]
    fc_bp = fc_b[perm].reshape(1, feat)

    def temporal_stage(wt, bias, t_in, hc, wc, ci, co):
        # ConvTranspose3d (ci,co,(3,1,1)), stride (2,1,1), pad (1,0,0), outpad (1,0,0)
        wt = np.asarray(wt, np.float32)
        t_out = 2 * t_in
        ls, rs = [], []
        for kt in range(3):
            L = np.zeros((t_out * hc, t_in * hc), np.float32)
            for ti in range(t_in):
                to = 2 * ti - 1 + kt
                if 0 <= to < t_out:
                    L[to * hc:(to + 1) * hc, ti * hc:(ti + 1) * hc] = np.eye(hc)
            ls.append(L)
            R = np.kron(np.eye(wc, dtype=np.float32), wt[:, :, kt, 0, 0])   # (wc*ci, wc*co)
            rs.append(np.kron(np.eye(bb, dtype=np.float32), R))             # batch in lanes
        L_cat = np.concatenate(ls, axis=1)                # (Mo, 3*Mi)
        R_cat = np.concatenate(rs, axis=1)                # (bb*wc*ci, 3*bb*wc*co)
        b_row = np.tile(np.tile(np.asarray(bias, np.float32), wc), bb).reshape(1, bb * wc * co)
        return dict(L=jnp.asarray(L_cat, jnp.bfloat16),
                    R=jnp.asarray(R_cat, jnp.bfloat16),
                    b=jnp.asarray(b_row, jnp.float32)), t_out

    def spatial_stage(wt, bias, tc, h_in, w_in, ci, co):
        # ConvTranspose3d (ci,co,(1,3,3)), stride (1,2,2), pad (0,1,1), outpad (0,1,1)
        wt = np.asarray(wt, np.float32)
        h_out, w_out = 2 * h_in, 2 * w_in
        ls, rs = [], []
        for kh in range(3):
            L = np.zeros((tc * h_out, tc * h_in), np.float32)
            for t in range(tc):
                for hi in range(h_in):
                    ho = 2 * hi - 1 + kh
                    if 0 <= ho < h_out:
                        L[t * h_out + ho, t * h_in + hi] = 1.0
            ls.append(L)
            R = np.zeros((w_in * ci, w_out * co), np.float32)
            for wi in range(w_in):
                for kw in range(3):
                    wo = 2 * wi - 1 + kw
                    if 0 <= wo < w_out:
                        R[wi * ci:(wi + 1) * ci, wo * co:(wo + 1) * co] = wt[:, :, 0, kh, kw]
            rs.append(np.kron(np.eye(bb, dtype=np.float32), R))
        L_cat = np.concatenate(ls, axis=1)
        R_cat = np.concatenate(rs, axis=1)
        b_row = np.tile(np.tile(np.asarray(bias, np.float32), w_out), bb).reshape(1, bb * w_out * co)
        return dict(L=jnp.asarray(L_cat, jnp.bfloat16),
                    R=jnp.asarray(R_cat, jnp.bfloat16),
                    b=jnp.asarray(b_row, jnp.float32)), (h_out, w_out)

    stages = []
    tc, hc, wc = t0, h0, w0
    st, tc = temporal_stage(params["td3_w"], params["td3_b"], tc, hc, wc, 16, 16); stages.append(st)
    st, (hc, wc) = spatial_stage(params["d3_w"], params["d3_b"], tc, hc, wc, 16, 8); stages.append(st)
    st, tc = temporal_stage(params["td2_w"], params["td2_b"], tc, hc, wc, 8, 8); stages.append(st)
    st, (hc, wc) = spatial_stage(params["d2_w"], params["d2_b"], tc, hc, wc, 8, 4); stages.append(st)
    st, tc = temporal_stage(params["td1_w"], params["td1_b"], tc, hc, wc, 4, 4); stages.append(st)
    st, (hc, wc) = spatial_stage(params["d1_w"], params["d1_b"], tc, hc, wc, 4, C); stages.append(st)
    assert (tc, hc, wc) == (T, H, W)

    return {"fc_w": jnp.asarray(fc_wp, jnp.bfloat16),
            "fc_b": jnp.asarray(fc_bp, jnp.float32),
            "stages": stages}


# ------------------------------ forward pass ------------------------------- #
def decoder_forward(prepped, z, *, C, T, H, W):
    B = z.shape[0]
    t0, h0, w0 = T // 8, H // 8, W // 8
    feat = 16 * t0 * h0 * w0

    stages = prepped["stages"]
    # bb (batch elements per grid step) is baked into the prepared weights.
    bb = stages[-1]["b"].shape[1] // (W * C)
    assert B % bb == 0, (B, bb)
    nb = B // bb

    z2 = z.reshape(B, feat)                      # == PyTorch z.view(B, -1)

    weights = [prepped["fc_w"], prepped["fc_b"]]
    for st in stages:
        weights += [st["L"], st["R"], st["b"]]

    m_out, n_out = T * H, bb * W * C             # lane-dense output columns
    in_specs = [pl.BlockSpec((bb, feat), lambda i: (i, 0))]
    for wgt in weights:                          # grid-invariant full-array blocks
        in_specs.append(pl.BlockSpec(wgt.shape, lambda i, nd=wgt.ndim: (0,) * nd))
    out_spec = pl.BlockSpec((1, m_out, n_out), lambda i: (i, 0, 0))

    # Advisory cost estimate for the XLA scheduler.
    flops = 2 * bb * feat * feat
    for st in stages:
        mo, mi3 = st["L"].shape
        nin_b, n3 = st["R"].shape
        no_b = st["b"].shape[1]
        flops += 2 * (mi3 // 3) * nin_b * n3 + 2 * mo * mi3 * no_b
    flops *= nb
    bytes_accessed = int(z2.size * z2.dtype.itemsize
                         + nb * m_out * n_out * 4
                         + sum(int(w.size) * w.dtype.itemsize for w in weights))
    cost = pl.CostEstimate(flops=int(flops), transcendentals=0,
                           bytes_accessed=bytes_accessed)

    kernel = functools.partial(
        _decoder_kernel,
        num_stages=len(stages),
        bb=bb,
        th0=t0 * h0,
        wc0=w0 * 16,
        relu_flags=(True, True, True, True, True, False),
    )
    out = pl.pallas_call(
        kernel,
        grid=(nb,),
        out_shape=jax.ShapeDtypeStruct((nb, m_out, n_out), jnp.float32),
        in_specs=in_specs,
        out_specs=out_spec,
        compiler_params=pltpu.CompilerParams(dimension_semantics=("parallel",)),
        cost_estimate=cost,
    )(z2, *weights)

    # rows=(t,h), cols=(b,w,c): one tiny boundary transpose back to NCDHW.
    out = out.reshape(nb, T, H, bb, W, C)
    out = out.transpose(0, 3, 5, 1, 2, 4).reshape(B, C, T, H, W)
    return out


# ------------------------------- parameters -------------------------------- #
def init_decoder_params(key, C, T, H, W):
    feat = 16 * (T // 8) * (H // 8) * (W // 8)
    keys = jax.random.split(key, 14)

    def w(k, shape):
        return jax.random.normal(k, shape, jnp.float32) * 0.1

    return {
        "fc_w": w(keys[0], (feat, feat)),        # PyTorch Linear convention (out, in)
        "fc_b": w(keys[1], (feat,)),
        "td3_w": w(keys[2], (16, 16, 3, 1, 1)),
        "td3_b": w(keys[3], (16,)),
        "d3_w": w(keys[4], (16, 8, 1, 3, 3)),
        "d3_b": w(keys[5], (8,)),
        "td2_w": w(keys[6], (8, 8, 3, 1, 1)),
        "td2_b": w(keys[7], (8,)),
        "d2_w": w(keys[8], (8, 4, 1, 3, 3)),
        "d2_b": w(keys[9], (4,)),
        "td1_w": w(keys[10], (4, 4, 3, 1, 1)),
        "td1_b": w(keys[11], (4,)),
        "d1_w": w(keys[12], (4, C, 1, 3, 3)),
        "d1_b": w(keys[13], (C,)),
    }


# --------------------------- pure-JAX reference ----------------------------- #
def _conv_transpose3d_ref(x, w, b, stride, padding, out_padding):
    kt, kh, kw = w.shape[2], w.shape[3], w.shape[4]
    rhs = jnp.flip(w, axis=(2, 3, 4)).transpose(1, 0, 2, 3, 4)   # (Co, Ci, kT,kH,kW)
    pads = [(kt - 1 - padding[0], kt - 1 - padding[0] + out_padding[0]),
            (kh - 1 - padding[1], kh - 1 - padding[1] + out_padding[1]),
            (kw - 1 - padding[2], kw - 1 - padding[2] + out_padding[2])]
    y = jax.lax.conv_general_dilated(
        x, rhs, window_strides=(1, 1, 1), padding=pads,
        lhs_dilation=stride, rhs_dilation=(1, 1, 1),
        dimension_numbers=("NCDHW", "OIDHW", "NCDHW"),
        precision=jax.lax.Precision.HIGHEST)
    return y + b.reshape(1, -1, 1, 1, 1)


def decoder_forward_ref(params, z, *, C, T, H, W):
    B = z.shape[0]
    h = z.reshape(B, -1)
    h = jax.nn.relu(jnp.dot(h, params["fc_w"].T,
                            precision=jax.lax.Precision.HIGHEST) + params["fc_b"])
    h = h.reshape(B, 16, T // 8, H // 8, W // 8)
    h = jax.nn.relu(_conv_transpose3d_ref(h, params["td3_w"], params["td3_b"], (2, 1, 1), (1, 0, 0), (1, 0, 0)))
    h = jax.nn.relu(_conv_transpose3d_ref(h, params["d3_w"], params["d3_b"], (1, 2, 2), (0, 1, 1), (0, 1, 1)))
    h = jax.nn.relu(_conv_transpose3d_ref(h, params["td2_w"], params["td2_b"], (2, 1, 1), (1, 0, 0), (1, 0, 0)))
    h = jax.nn.relu(_conv_transpose3d_ref(h, params["d2_w"], params["d2_b"], (1, 2, 2), (0, 1, 1), (0, 1, 1)))
    h = jax.nn.relu(_conv_transpose3d_ref(h, params["td1_w"], params["td1_b"], (2, 1, 1), (1, 0, 0), (1, 0, 0)))
    h = _conv_transpose3d_ref(h, params["d1_w"], params["d1_b"], (1, 2, 2), (0, 1, 1), (0, 1, 1))
    return h


if __name__ == "__main__":
    C, T, H, W = 4, 8, 16, 16
    B = 2

    key = jax.random.PRNGKey(0)
    kp, kz = jax.random.split(key)
    params = init_decoder_params(kp, C, T, H, W)
    # latent z as produced by the matching Encoder: (B, 16, T//8, H//8, W//8)
    z = jax.random.normal(kz, (B, 16, T // 8, H // 8, W // 8), jnp.float32)

    # Batch blocking: 2 parallel grid steps (one per v7x TensorCore) once B is
    # big enough; small batches go batch-in-lanes in a single step.
    nb = 2 if (B % 2 == 0 and B >= 4) else 1
    bb = B // nb
    prepped = prepare_decoder_params(params, C=C, T=T, H=H, W=W, batch_block=bb)

    fwd = jax.jit(functools.partial(decoder_forward, C=C, T=T, H=H, W=W))
    out = jax.block_until_ready(fwd(prepped, z))

    assert out.shape == (B, C, T, H, W), out.shape
    assert out.dtype == jnp.float32

    ref = jax.block_until_ready(decoder_forward_ref(params, z, C=C, T=T, H=H, W=W))
    max_err = float(jnp.max(jnp.abs(out - ref)))
    scale = max(1.0, float(jnp.max(jnp.abs(ref))))
    # bf16 MXU operands with f32 accumulation: tolerance scaled accordingly.
    assert max_err / scale < 4e-2, f"mismatch vs reference: {max_err} (scale {scale})"

    print("KERNEL_OK")
</pallas_src>

<mosaic_0001>
module attributes {stable_mosaic.version = 11 : i64} {
  func.func @_decoder_kernel(%arg0: i32, %arg1: memref<2x64xf32, #tpu.memory_space<vmem>>, %arg2: memref<64x64xbf16, #tpu.memory_space<vmem>>, %arg3: memref<1x64xf32, #tpu.memory_space<vmem>>, %arg4: memref<4x6xbf16, #tpu.memory_space<vmem>>, %arg5: memref<64x192xbf16, #tpu.memory_space<vmem>>, %arg6: memref<1x64xf32, #tpu.memory_space<vmem>>, %arg7: memref<8x12xbf16, #tpu.memory_space<vmem>>, %arg8: memref<64x192xbf16, #tpu.memory_space<vmem>>, %arg9: memref<1x64xf32, #tpu.memory_space<vmem>>, %arg10: memref<16x24xbf16, #tpu.memory_space<vmem>>, %arg11: memref<64x192xbf16, #tpu.memory_space<vmem>>, %arg12: memref<1x64xf32, #tpu.memory_space<vmem>>, %arg13: memref<32x48xbf16, #tpu.memory_space<vmem>>, %arg14: memref<64x192xbf16, #tpu.memory_space<vmem>>, %arg15: memref<1x64xf32, #tpu.memory_space<vmem>>, %arg16: memref<64x96xbf16, #tpu.memory_space<vmem>>, %arg17: memref<64x192xbf16, #tpu.memory_space<vmem>>, %arg18: memref<1x64xf32, #tpu.memory_space<vmem>>, %arg19: memref<128x192xbf16, #tpu.memory_space<vmem>>, %arg20: memref<64x384xbf16, #tpu.memory_space<vmem>>, %arg21: memref<1x128xf32, #tpu.memory_space<vmem>>, %arg22: memref<1x128x128xf32, #tpu.memory_space<vmem>>) attributes {dimension_semantics = [#tpu.dimension_semantics<parallel>], iteration_bounds = array<i64: 1>, scalar_prefetch = 0 : i64, scratch_operands = 0 : i64, tpu.core_type = #tpu.core_type<tc>, window_params = [{transform_indices = @transform_0, window_bounds = array<i64: 2, 64>}, {pipeline_mode = #tpu.pipeline_mode<synchronous>, transform_indices = @transform_1, window_bounds = array<i64: 64, 64>}, {pipeline_mode = #tpu.pipeline_mode<synchronous>, transform_indices = @transform_2, window_bounds = array<i64: 1, 64>}, {pipeline_mode = #tpu.pipeline_mode<synchronous>, transform_indices = @transform_3, window_bounds = array<i64: 4, 6>}, {pipeline_mode = #tpu.pipeline_mode<synchronous>, transform_indices = @transform_4, window_bounds = array<i64: 64, 192>}, {pipeline_mode = #tpu.pipeline_mode<synchronous>, transform_indices = @transform_5, window_bounds = array<i64: 1, 64>}, {pipeline_mode = #tpu.pipeline_mode<synchronous>, transform_indices = @transform_6, window_bounds = array<i64: 8, 12>}, {pipeline_mode = #tpu.pipeline_mode<synchronous>, transform_indices = @transform_7, window_bounds = array<i64: 64, 192>}, {pipeline_mode = #tpu.pipeline_mode<synchronous>, transform_indices = @transform_8, window_bounds = array<i64: 1, 64>}, {pipeline_mode = #tpu.pipeline_mode<synchronous>, transform_indices = @transform_9, window_bounds = array<i64: 16, 24>}, {pipeline_mode = #tpu.pipeline_mode<synchronous>, transform_indices = @transform_10, window_bounds = array<i64: 64, 192>}, {pipeline_mode = #tpu.pipeline_mode<synchronous>, transform_indices = @transform_11, window_bounds = array<i64: 1, 64>}, {pipeline_mode = #tpu.pipeline_mode<synchronous>, transform_indices = @transform_12, window_bounds = array<i64: 32, 48>}, {pipeline_mode = #tpu.pipeline_mode<synchronous>, transform_indices = @transform_13, window_bounds = array<i64: 64, 192>}, {pipeline_mode = #tpu.pipeline_mode<synchronous>, transform_indices = @transform_14, window_bounds = array<i64: 1, 64>}, {pipeline_mode = #tpu.pipeline_mode<synchronous>, transform_indices = @transform_15, window_bounds = array<i64: 64, 96>}, {pipeline_mode = #tpu.pipeline_mode<synchronous>, transform_indices = @transform_16, window_bounds = array<i64: 64, 192>}, {pipeline_mode = #tpu.pipeline_mode<synchronous>, transform_indices = @transform_17, window_bounds = array<i64: 1, 64>}, {pipeline_mode = #tpu.pipeline_mode<synchronous>, transform_indices = @transform_18, window_bounds = array<i64: 128, 192>}, {pipeline_mode = #tpu.pipeline_mode<synchronous>, transform_indices = @transform_19, window_bounds = array<i64: 64, 384>}, {pipeline_mode = #tpu.pipeline_mode<synchronous>, transform_indices = @transform_20, window_bounds = array<i64: 1, 128>}, {transform_indices = @transform_21, window_bounds = array<i64: 1, 128, 128>}]} {
    %c0 = arith.constant 0 : index
    %c0_0 = arith.constant 0 : index
    %0 = vector.load %arg1[%c0, %c0_0] : memref<2x64xf32, #tpu.memory_space<vmem>>, vector<2x64xf32>
    %1 = arith.truncf %0 : vector<2x64xf32> to vector<2x64xbf16>
    %c0_1 = arith.constant 0 : index
    %c0_2 = arith.constant 0 : index
    %2 = vector.load %arg2[%c0_1, %c0_2] : memref<64x64xbf16, #tpu.memory_space<vmem>>, vector<64x64xbf16>
    %cst = arith.constant dense<0.000000e+00> : vector<2x64xf32>
    %3 = tpu.matmul %1, %2, %cst {dimension_numbers = #tpu.dot_dimension_numbers<[1], [0], [0], [1], [0, 0, 1, 1], [], []>} : vector<2x64xbf16>, vector<64x64xbf16>, vector<2x64xf32> -> vector<2x64xf32>
    %c0_3 = arith.constant 0 : index
    %c0_4 = arith.constant 0 : index
    %4 = vector.load %arg3[%c0_3, %c0_4] : memref<1x64xf32, #tpu.memory_space<vmem>>, vector<1x64xf32>
    %5 = vector.broadcast %4 : vector<1x64xf32> to vector<2x64xf32>
    %6 = arith.addf %3, %5 : vector<2x64xf32>
    %cst_5 = arith.constant 0.000000e+00 : f32
    %7 = vector.broadcast %cst_5 : f32 to vector<2x64xf32>
    %8 = arith.maximumf %6, %7 : vector<2x64xf32>
    %9 = vector.extract_strided_slice %8 {offsets = [0, 0], sizes = [1, 32], strides = [1, 1]} : vector<2x64xf32> to vector<1x32xf32>
    %10 = vector.extract_strided_slice %8 {offsets = [0, 32], sizes = [1, 32], strides = [1, 1]} : vector<2x64xf32> to vector<1x32xf32>
    %11 = tpu.concatenate %9, %10 in 0 : vector<1x32xf32>, vector<1x32xf32> -> vector<2x32xf32>
    %12 = vector.extract_strided_slice %8 {offsets = [1, 0], sizes = [1, 32], strides = [1, 1]} : vector<2x64xf32> to vector<1x32xf32>
    %13 = vector.extract_strided_slice %8 {offsets = [1, 32], sizes = [1, 32], strides = [1, 1]} : vector<2x64xf32> to vector<1x32xf32>
    %14 = tpu.concatenate %12, %13 in 0 : vector<1x32xf32>, vector<1x32xf32> -> vector<2x32xf32>
    %15 = tpu.concatenate %11, %14 in 1 : vector<2x32xf32>, vector<2x32xf32> -> vector<2x64xf32>
    %16 = arith.truncf %15 : vector<2x64xf32> to vector<2x64xbf16>
    %c0_6 = arith.constant 0 : index
    %c0_7 = arith.constant 0 : index
    %17 = vector.load %arg5[%c0_6, %c0_7] : memref<64x192xbf16, #tpu.memory_space<vmem>>, vector<64x192xbf16>
    %cst_8 = arith.constant dense<0.000000e+00> : vector<2x192xf32>
    %18 = tpu.matmul %16, %17, %cst_8 {dimension_numbers = #tpu.dot_dimension_numbers<[1], [0], [0], [1], [0, 0, 1, 1], [], []>} : vector<2x64xbf16>, vector<64x192xbf16>, vector<2x192xf32> -> vector<2x192xf32>
    %19 = vector.extract_strided_slice %18 {offsets = [0, 0], sizes = [2, 64], strides = [1, 1]} : vector<2x192xf32> to vector<2x64xf32>
    %20 = vector.extract_strided_slice %18 {offsets = [0, 64], sizes = [2, 64], strides = [1, 1]} : vector<2x192xf32> to vector<2x64xf32>
    %21 = vector.extract_strided_slice %18 {offsets = [0, 128], sizes = [2, 64], strides = [1, 1]} : vector<2x192xf32> to vector<2x64xf32>
    %22 = tpu.concatenate %19, %20, %21 in 0 : vector<2x64xf32>, vector<2x64xf32>, vector<2x64xf32> -> vector<6x64xf32>
    %c0_9 = arith.constant 0 : index
    %c0_10 = arith.constant 0 : index
    %23 = vector.load %arg4[%c0_9, %c0_10] : memref<4x6xbf16, #tpu.memory_space<vmem>>, vector<4x6xbf16>
    %24 = arith.truncf %22 : vector<6x64xf32> to vector<6x64xbf16>
    %cst_11 = arith.constant dense<0.000000e+00> : vector<4x64xf32>
    %25 = tpu.matmul %23, %24, %cst_11 {dimension_numbers = #tpu.dot_dimension_numbers<[1], [0], [0], [1], [0, 0, 1, 1], [], []>} : vector<4x6xbf16>, vector<6x64xbf16>, vector<4x64xf32> -> vector<4x64xf32>
    %c0_12 = arith.constant 0 : index
    %c0_13 = arith.constant 0 : index
    %26 = vector.load %arg6[%c0_12, %c0_13] : memref<1x64xf32, #tpu.memory_space<vmem>>, vector<1x64xf32>
    %27 = vector.broadcast %26 : vector<1x64xf32> to vector<4x64xf32>
    %28 = arith.addf %25, %27 : vector<4x64xf32>
    %cst_14 = arith.constant 0.000000e+00 : f32
    %29 = vector.broadcast %cst_14 : f32 to vector<4x64xf32>
    %30 = arith.maximumf %28, %29 : vector<4x64xf32>
    %31 = arith.truncf %30 : vector<4x64xf32> to vector<4x64xbf16>
    %c0_15 = arith.constant 0 : index
    %c0_16 = arith.constant 0 : index
    %32 = vector.load %arg8[%c0_15, %c0_16] : memref<64x192xbf16, #tpu.memory_space<vmem>>, vector<64x192xbf16>
    %cst_17 = arith.constant dense<0.000000e+00> : vector<4x192xf32>
    %33 = tpu.matmul %31, %32, %cst_17 {dimension_numbers = #tpu.dot_dimension_numbers<[1], [0], [0], [1], [0, 0, 1, 1], [], []>} : vector<4x64xbf16>, vector<64x192xbf16>, vector<4x192xf32> -> vector<4x192xf32>
    %34 = vector.extract_strided_slice %33 {offsets = [0, 0], sizes = [4, 64], strides = [1, 1]} : vector<4x192xf32> to vector<4x64xf32>
    %35 = vector.extract_strided_slice %33 {offsets = [0, 64], sizes = [4, 64], strides = [1, 1]} : vector<4x192xf32> to vector<4x64xf32>
    %36 = vector.extract_strided_slice %33 {offsets = [0, 128], sizes = [4, 64], strides = [1, 1]} : vector<4x192xf32> to vector<4x64xf32>
    %37 = tpu.concatenate %34, %35, %36 in 0 : vector<4x64xf32>, vector<4x64xf32>, vector<4x64xf32> -> vector<12x64xf32>
    %c0_18 = arith.constant 0 : index
    %c0_19 = arith.constant 0 : index
    %38 = vector.load %arg7[%c0_18, %c0_19] : memref<8x12xbf16, #tpu.memory_space<vmem>>, vector<8x12xbf16>
    %39 = arith.truncf %37 : vector<12x64xf32> to vector<12x64xbf16>
    %cst_20 = arith.constant dense<0.000000e+00> : vector<8x64xf32>
    %40 = tpu.matmul %38, %39, %cst_20 {dimension_numbers = #tpu.dot_dimension_numbers<[1], [0], [0], [1], [0, 0, 1, 1], [], []>} : vector<8x12xbf16>, vector<12x64xbf16>, vector<8x64xf32> -> vector<8x64xf32>
    %c0_21 = arith.constant 0 : index
    %c0_22 = arith.constant 0 : index
    %41 = vector.load %arg9[%c0_21, %c0_22] : memref<1x64xf32, #tpu.memory_space<vmem>>, vector<1x64xf32>
    %42 = vector.broadcast %41 : vector<1x64xf32> to vector<8x64xf32>
    %43 = arith.addf %40, %42 : vector<8x64xf32>
    %cst_23 = arith.constant 0.000000e+00 : f32
    %44 = vector.broadcast %cst_23 : f32 to vector<8x64xf32>
    %45 = arith.maximumf %43, %44 : vector<8x64xf32>
    %46 = arith.truncf %45 : vector<8x64xf32> to vector<8x64xbf16>
    %c0_24 = arith.constant 0 : index
    %c0_25 = arith.constant 0 : index
    %47 = vector.load %arg11[%c0_24, %c0_25] : memref<64x192xbf16, #tpu.memory_space<vmem>>, vector<64x192xbf16>
    %cst_26 = arith.constant dense<0.000000e+00> : vector<8x192xf32>
    %48 = tpu.matmul %46, %47, %cst_26 {dimension_numbers = #tpu.dot_dimension_numbers<[1], [0], [0], [1], [0, 0, 1, 1], [], []>} : vector<8x64xbf16>, vector<64x192xbf16>, vector<8x192xf32> -> vector<8x192xf32>
    %49 = vector.extract_strided_slice %48 {offsets = [0, 0], sizes = [8, 64], strides = [1, 1]} : vector<8x192xf32> to vector<8x64xf32>
    %50 = vector.extract_strided_slice %48 {offsets = [0, 64], sizes = [8, 64], strides = [1, 1]} : vector<8x192xf32> to vector<8x64xf32>
    %51 = vector.extract_strided_slice %48 {offsets = [0, 128], sizes = [8, 64], strides = [1, 1]} : vector<8x192xf32> to vector<8x64xf32>
    %52 = tpu.concatenate %49, %50, %51 in 0 : vector<8x64xf32>, vector<8x64xf32>, vector<8x64xf32> -> vector<24x64xf32>
    %c0_27 = arith.constant 0 : index
    %c0_28 = arith.constant 0 : index
    %53 = vector.load %arg10[%c0_27, %c0_28] : memref<16x24xbf16, #tpu.memory_space<vmem>>, vector<16x24xbf16>
    %54 = arith.truncf %52 : vector<24x64xf32> to vector<24x64xbf16>
    %cst_29 = arith.constant dense<0.000000e+00> : vector<16x64xf32>
    %55 = tpu.matmul %53, %54, %cst_29 {dimension_numbers = #tpu.dot_dimension_numbers<[1], [0], [0], [1], [0, 0, 1, 1], [], []>} : vector<16x24xbf16>, vector<24x64xbf16>, vector<16x64xf32> -> vector<16x64xf32>
    %c0_30 = arith.constant 0 : index
    %c0_31 = arith.constant 0 : index
    %56 = vector.load %arg12[%c0_30, %c0_31] : memref<1x64xf32, #tpu.memory_space<vmem>>, vector<1x64xf32>
    %57 = vector.broadcast %56 : vector<1x64xf32> to vector<16x64xf32>
    %58 = arith.addf %55, %57 : vector<16x64xf32>
    %cst_32 = arith.constant 0.000000e+00 : f32
    %59 = vector.broadcast %cst_32 : f32 to vector<16x64xf32>
    %60 = arith.maximumf %58, %59 : vector<16x64xf32>
    %61 = arith.truncf %60 : vector<16x64xf32> to vector<16x64xbf16>
    %c0_33 = arith.constant 0 : index
    %c0_34 = arith.constant 0 : index
    %62 = vector.load %arg14[%c0_33, %c0_34] : memref<64x192xbf16, #tpu.memory_space<vmem>>, vector<64x192xbf16>
    %cst_35 = arith.constant dense<0.000000e+00> : vector<16x192xf32>
    %63 = tpu.matmul %61, %62, %cst_35 {dimension_numbers = #tpu.dot_dimension_numbers<[1], [0], [0], [1], [0, 0, 1, 1], [], []>} : vector<16x64xbf16>, vector<64x192xbf16>, vector<16x192xf32> -> vector<16x192xf32>
    %64 = vector.extract_strided_slice %63 {offsets = [0, 0], sizes = [16, 64], strides = [1, 1]} : vector<16x192xf32> to vector<16x64xf32>
    %65 = vector.extract_strided_slice %63 {offsets = [0, 64], sizes = [16, 64], strides = [1, 1]} : vector<16x192xf32> to vector<16x64xf32>
    %66 = vector.extract_strided_slice %63 {offsets = [0, 128], sizes = [16, 64], strides = [1, 1]} : vector<16x192xf32> to vector<16x64xf32>
    %67 = tpu.concatenate %64, %65, %66 in 0 : vector<16x64xf32>, vector<16x64xf32>, vector<16x64xf32> -> vector<48x64xf32>
    %c0_36 = arith.constant 0 : index
    %c0_37 = arith.constant 0 : index
    %68 = vector.load %arg13[%c0_36, %c0_37] : memref<32x48xbf16, #tpu.memory_space<vmem>>, vector<32x48xbf16>
    %69 = arith.truncf %67 : vector<48x64xf32> to vector<48x64xbf16>
    %cst_38 = arith.constant dense<0.000000e+00> : vector<32x64xf32>
    %70 = tpu.matmul %68, %69, %cst_38 {dimension_numbers = #tpu.dot_dimension_numbers<[1], [0], [0], [1], [0, 0, 1, 1], [], []>} : vector<32x48xbf16>, vector<48x64xbf16>, vector<32x64xf32> -> vector<32x64xf32>
    %c0_39 = arith.constant 0 : index
    %c0_40 = arith.constant 0 : index
    %71 = vector.load %arg15[%c0_39, %c0_40] : memref<1x64xf32, #tpu.memory_space<vmem>>, vector<1x64xf32>
    %72 = vector.broadcast %71 : vector<1x64xf32> to vector<32x64xf32>
    %73 = arith.addf %70, %72 : vector<32x64xf32>
    %cst_41 = arith.constant 0.000000e+00 : f32
    %74 = vector.broadcast %cst_41 : f32 to vector<32x64xf32>
    %75 = arith.maximumf %73, %74 : vector<32x64xf32>
    %76 = arith.truncf %75 : vector<32x64xf32> to vector<32x64xbf16>
    %c0_42 = arith.constant 0 : index
    %c0_43 = arith.constant 0 : index
    %77 = vector.load %arg17[%c0_42, %c0_43] : memref<64x192xbf16, #tpu.memory_space<vmem>>, vector<64x192xbf16>
    %cst_44 = arith.constant dense<0.000000e+00> : vector<32x192xf32>
    %78 = tpu.matmul %76, %77, %cst_44 {dimension_numbers = #tpu.dot_dimension_numbers<[1], [0], [0], [1], [0, 0, 1, 1], [], []>} : vector<32x64xbf16>, vector<64x192xbf16>, vector<32x192xf32> -> vector<32x192xf32>
    %79 = vector.extract_strided_slice %78 {offsets = [0, 0], sizes = [32, 64], strides = [1, 1]} : vector<32x192xf32> to vector<32x64xf32>
    %80 = vector.extract_strided_slice %78 {offsets = [0, 64], sizes = [32, 64], strides = [1, 1]} : vector<32x192xf32> to vector<32x64xf32>
    %81 = vector.extract_strided_slice %78 {offsets = [0, 128], sizes = [32, 64], strides = [1, 1]} : vector<32x192xf32> to vector<32x64xf32>
    %82 = tpu.concatenate %79, %80, %81 in 0 : vector<32x64xf32>, vector<32x64xf32>, vector<32x64xf32> -> vector<96x64xf32>
    %c0_45 = arith.constant 0 : index
    %c0_46 = arith.constant 0 : index
    %83 = vector.load %arg16[%c0_45, %c0_46] : memref<64x96xbf16, #tpu.memory_space<vmem>>, vector<64x96xbf16>
    %84 = arith.truncf %82 : vector<96x64xf32> to vector<96x64xbf16>
    %cst_47 = arith.constant dense<0.000000e+00> : vector<64x64xf32>
    %85 = tpu.matmul %83, %84, %cst_47 {dimension_numbers = #tpu.dot_dimension_numbers<[1], [0], [0], [1], [0, 0, 1, 1], [], []>} : vector<64x96xbf16>, vector<96x64xbf16>, vector<64x64xf32> -> vector<64x64xf32>
    %c0_48 = arith.constant 0 : index
    %c0_49 = arith.constant 0 : index
    %86 = vector.load %arg18[%c0_48, %c0_49] : memref<1x64xf32, #tpu.memory_space<vmem>>, vector<1x64xf32>
    %87 = vector.broadcast %86 : vector<1x64xf32> to vector<64x64xf32>
    %88 = arith.addf %85, %87 : vector<64x64xf32>
    %cst_50 = arith.constant 0.000000e+00 : f32
    %89 = vector.broadcast %cst_50 : f32 to vector<64x64xf32>
    %90 = arith.maximumf %88, %89 : vector<64x64xf32>
    %91 = arith.truncf %90 : vector<64x64xf32> to vector<64x64xbf16>
    %c0_51 = arith.constant 0 : index
    %c0_52 = arith.constant 0 : index
    %92 = vector.load %arg20[%c0_51, %c0_52] : memref<64x384xbf16, #tpu.memory_space<vmem>>, vector<64x384xbf16>
    %cst_53 = arith.constant dense<0.000000e+00> : vector<64x384xf32>
    %93 = tpu.matmul %91, %92, %cst_53 {dimension_numbers = #tpu.dot_dimension_numbers<[1], [0], [0], [1], [0, 0, 1, 1], [], []>} : vector<64x64xbf16>, vector<64x384xbf16>, vector<64x384xf32> -> vector<64x384xf32>
    %94 = vector.extract_strided_slice %93 {offsets = [0, 0], sizes = [64, 128], strides = [1, 1]} : vector<64x384xf32> to vector<64x128xf32>
    %95 = vector.extract_strided_slice %93 {offsets = [0, 128], sizes = [64, 128], strides = [1, 1]} : vector<64x384xf32> to vector<64x128xf32>
    %96 = vector.extract_strided_slice %93 {offsets = [0, 256], sizes = [64, 128], strides = [1, 1]} : vector<64x384xf32> to vector<64x128xf32>
    %97 = tpu.concatenate %94, %95, %96 in 0 : vector<64x128xf32>, vector<64x128xf32>, vector<64x128xf32> -> vector<192x128xf32>
    %c0_54 = arith.constant 0 : index
    %c0_55 = arith.constant 0 : index
    %98 = vector.load %arg19[%c0_54, %c0_55] : memref<128x192xbf16, #tpu.memory_space<vmem>>, vector<128x192xbf16>
    %99 = arith.truncf %97 : vector<192x128xf32> to vector<192x128xbf16>
    %cst_56 = arith.constant dense<0.000000e+00> : vector<128x128xf32>
    %100 = tpu.matmul %98, %99, %cst_56 {dimension_numbers = #tpu.dot_dimension_numbers<[1], [0], [0], [1], [0, 0, 1, 1], [], []>} : vector<128x192xbf16>, vector<192x128xbf16>, vector<128x128xf32> -> vector<128x128xf32>
    %c0_57 = arith.constant 0 : index
    %c0_58 = arith.constant 0 : index
    %101 = vector.load %arg21[%c0_57, %c0_58] : memref<1x128xf32, #tpu.memory_space<vmem>>, vector<1x128xf32>
    %102 = vector.broadcast %101 : vector<1x128xf32> to vector<128x128xf32>
    %103 = arith.addf %100, %102 : vector<128x128xf32>
    %c0_59 = arith.constant 0 : index
    %c0_60 = arith.constant 0 : index
    %c0_61 = arith.constant 0 : index
    %104 = vector.load %arg22[%c0_59, %c0_60, %c0_61] : memref<1x128x128xf32, #tpu.memory_space<vmem>>, vector<1x128x128xf32>
    %105 = vector.shape_cast %104 : vector<1x128x128xf32> to vector<128x128xf32>
    %106 = vector.shape_cast %103 : vector<128x128xf32> to vector<1x128x128xf32>
    tpu.vector_store %arg22[%c0_59, %c0_60, %c0_61], %106 {strides = array<i32>} : memref<1x128x128xf32, #tpu.memory_space<vmem>>, vector<1x128x128xf32>,
    return
  }
  func.func @transform_0(%arg0: i32) -> (i32, i32) {
    %c0_i32 = arith.constant 0 : i32
    %c0_i32_0 = arith.constant 0 : i32
    return %arg0, %c0_i32 : i32, i32
  }
  func.func @transform_1(%arg0: i32) -> (i32, i32) {
    %c0_i32 = arith.constant 0 : i32
    %c0_i32_0 = arith.constant 0 : i32
    %c0_i32_1 = arith.constant 0 : i32
    return %c0_i32, %c0_i32_0 : i32, i32
  }
  func.func @transform_2(%arg0: i32) -> (i32, i32) {
    %c0_i32 = arith.constant 0 : i32
    %c0_i32_0 = arith.constant 0 : i32
    %c0_i32_1 = arith.constant 0 : i32
    return %c0_i32, %c0_i32_0 : i32, i32
  }
  func.func @transform_3(%arg0: i32) -> (i32, i32) {
    %c0_i32 = arith.constant 0 : i32
    %c0_i32_0 = arith.constant 0 : i32
    %c0_i32_1 = arith.constant 0 : i32
    return %c0_i32, %c0_i32_0 : i32, i32
  }
  func.func @transform_4(%arg0: i32) -> (i32, i32) {
    %c0_i32 = arith.constant 0 : i32
    %c0_i32_0 = arith.constant 0 : i32
    %c0_i32_1 = arith.constant 0 : i32
    return %c0_i32, %c0_i32_0 : i32, i32
  }
  func.func @transform_5(%arg0: i32) -> (i32, i32) {
    %c0_i32 = arith.constant 0 : i32
    %c0_i32_0 = arith.constant 0 : i32
    %c0_i32_1 = arith.constant 0 : i32
    return %c0_i32, %c0_i32_0 : i32, i32
  }
  func.func @transform_6(%arg0: i32) -> (i32, i32) {
    %c0_i32 = arith.constant 0 : i32
    %c0_i32_0 = arith.constant 0 : i32
    %c0_i32_1 = arith.constant 0 : i32
    return %c0_i32, %c0_i32_0 : i32, i32
  }
  func.func @transform_7(%arg0: i32) -> (i32, i32) {
    %c0_i32 = arith.constant 0 : i32
    %c0_i32_0 = arith.constant 0 : i32
    %c0_i32_1 = arith.constant 0 : i32
    return %c0_i32, %c0_i32_0 : i32, i32
  }
  func.func @transform_8(%arg0: i32) -> (i32, i32) {
    %c0_i32 = arith.constant 0 : i32
    %c0_i32_0 = arith.constant 0 : i32
    %c0_i32_1 = arith.constant 0 : i32
    return %c0_i32, %c0_i32_0 : i32, i32
  }
  func.func @transform_9(%arg0: i32) -> (i32, i32) {
    %c0_i32 = arith.constant 0 : i32
    %c0_i32_0 = arith.constant 0 : i32
    %c0_i32_1 = arith.constant 0 : i32
    return %c0_i32, %c0_i32_0 : i32, i32
  }
  func.func @transform_10(%arg0: i32) -> (i32, i32) {
    %c0_i32 = arith.constant 0 : i32
    %c0_i32_0 = arith.constant 0 : i32
    %c0_i32_1 = arith.constant 0 : i32
    return %c0_i32, %c0_i32_0 : i32, i32
  }
  func.func @transform_11(%arg0: i32) -> (i32, i32) {
    %c0_i32 = arith.constant 0 : i32
    %c0_i32_0 = arith.constant 0 : i32
    %c0_i32_1 = arith.constant 0 : i32
    return %c0_i32, %c0_i32_0 : i32, i32
  }
  func.func @transform_12(%arg0: i32) -> (i32, i32) {
    %c0_i32 = arith.constant 0 : i32
    %c0_i32_0 = arith.constant 0 : i32
    %c0_i32_1 = arith.constant 0 : i32
    return %c0_i32, %c0_i32_0 : i32, i32
  }
  func.func @transform_13(%arg0: i32) -> (i32, i32) {
    %c0_i32 = arith.constant 0 : i32
    %c0_i32_0 = arith.constant 0 : i32
    %c0_i32_1 = arith.constant 0 : i32
    return %c0_i32, %c0_i32_0 : i32, i32
  }
  func.func @transform_14(%arg0: i32) -> (i32, i32) {
    %c0_i32 = arith.constant 0 : i32
    %c0_i32_0 = arith.constant 0 : i32
    %c0_i32_1 = arith.constant 0 : i32
    return %c0_i32, %c0_i32_0 : i32, i32
  }
  func.func @transform_15(%arg0: i32) -> (i32, i32) {
    %c0_i32 = arith.constant 0 : i32
    %c0_i32_0 = arith.constant 0 : i32
    %c0_i32_1 = arith.constant 0 : i32
    return %c0_i32, %c0_i32_0 : i32, i32
  }
  func.func @transform_16(%arg0: i32) -> (i32, i32) {
    %c0_i32 = arith.constant 0 : i32
    %c0_i32_0 = arith.constant 0 : i32
    %c0_i32_1 = arith.constant 0 : i32
    return %c0_i32, %c0_i32_0 : i32, i32
  }
  func.func @transform_17(%arg0: i32) -> (i32, i32) {
    %c0_i32 = arith.constant 0 : i32
    %c0_i32_0 = arith.constant 0 : i32
    %c0_i32_1 = arith.constant 0 : i32
    return %c0_i32, %c0_i32_0 : i32, i32
  }
  func.func @transform_18(%arg0: i32) -> (i32, i32) {
    %c0_i32 = arith.constant 0 : i32
    %c0_i32_0 = arith.constant 0 : i32
    %c0_i32_1 = arith.constant 0 : i32
    return %c0_i32, %c0_i32_0 : i32, i32
  }
  func.func @transform_19(%arg0: i32) -> (i32, i32) {
    %c0_i32 = arith.constant 0 : i32
    %c0_i32_0 = arith.constant 0 : i32
    %c0_i32_1 = arith.constant 0 : i32
    return %c0_i32, %c0_i32_0 : i32, i32
  }
  func.func @transform_20(%arg0: i32) -> (i32, i32) {
    %c0_i32 = arith.constant 0 : i32
    %c0_i32_0 = arith.constant 0 : i32
    %c0_i32_1 = arith.constant 0 : i32
    return %c0_i32, %c0_i32_0 : i32, i32
  }
  func.func @transform_21(%arg0: i32) -> (i32, i32, i32) {
    %c0_i32 = arith.constant 0 : i32
    %c0_i32_0 = arith.constant 0 : i32
    %c0_i32_1 = arith.constant 0 : i32
    return %arg0, %c0_i32, %c0_i32_0 : i32, i32, i32
  }
}

</mosaic_0001>

<bundles_post_ra>
// kernel: decoder_forward.1
= control target key start
LH: loop header
LB: loop body
LE: loop exit
PB: predicated region body
PF: predicated region fallthrough
CT: control target
= control target key end

     0   :  { %s2807_s0 = inlined_call_operand.vmem [shape: f32[2,64], index: 0, kind: input, shape index: {}]   ;;  %s2808_s1 = inlined_call_operand.vmem [shape: bf16[64,64], index: 1, kind: input, shape index: {}]   ;;  %s2809_s2 = inlined_call_operand.hbm [shape: f32[1,64], index: 2, kind: input, shape index: {}]   ;;  %s2810_s3 = inlined_call_operand.vmem [shape: bf16[4,6], index: 3, kind: input, shape index: {}]   ;;  %s2811_s4 = inlined_call_operand.vmem [shape: bf16[64,192], index: 4, kind: input, shape index: {}]   ;;  %s2812_s5 = inlined_call_operand.hbm [shape: f32[1,64], index: 5, kind: input, shape index: {}]   ;;  %s2813_s6 = inlined_call_operand.hbm [shape: bf16[8,12], index: 6, kind: input, shape index: {}]   ;;  %s2814_s7 = inlined_call_operand.vmem [shape: bf16[64,192], index: 7, kind: input, shape index: {}]   ;;  %s2815_s8 = inlined_call_operand.hbm [shape: f32[1,64], index: 8, kind: input, shape index: {}]   ;;  %s2816_s9 = inlined_call_operand.vmem [shape: bf16[16,24], index: 9, kind: input, shape index: {}]   ;;  %s2817_s10 = inlined_call_operand.hbm [shape: bf16[64,192], index: 10, kind: input, shape index: {}]   ;;  %s2818_s11 = inlined_call_operand.hbm [shape: f32[1,64], index: 11, kind: input, shape index: {}]   ;;  %s2819_s12 = inlined_call_operand.vmem [shape: bf16[32,48], index: 12, kind: input, shape index: {}]   ;;  %s2820_s13 = inlined_call_operand.hbm [shape: bf16[64,192], index: 13, kind: input, shape index: {}]   ;;  %s2821_s14 = inlined_call_operand.hbm [shape: f32[1,64], index: 14, kind: input, shape index: {}]   ;;  %s2822_s15 = inlined_call_operand.hbm [shape: bf16[64,96], index: 15, kind: input, shape index: {}]   ;;  %s2823_s16 = inlined_call_operand.hbm [shape: bf16[64,192], index: 16, kind: input, shape index: {}]   ;;  %s2824_s17 = inlined_call_operand.hbm [shape: f32[1,64], index: 17, kind: input, shape index: {}]   ;;  %s2825_s18 = inlined_call_operand.vmem [shape: bf16[128,192], index: 18, kind: input, shape index: {}]   ;;  %s2826_s19 = inlined_call_operand.vmem [shape: bf16[64,384], index: 19, kind: input, shape index: {}]   ;;  %s2827_s20 = inlined_call_operand.hbm [shape: f32[1,128], index: 20, kind: input, shape index: {}]   ;;  %s2828_s21 = inlined_call_operand.vmem [shape: f32[1,128,128], index: 21, kind: output, shape index: {}]  }
   0x1   :  { %2831 = sst [smem:[#allocation28_spill]] %s2807_s0 }
   0x2   :  { %2832 = sst [smem:[#allocation29_spill]] %s2808_s1 }
   0x3   :  { %2833 = sst [smem:[#allocation30_spill]] %s2809_s2 }
   0x4   :  { %2834 = sst [smem:[#allocation31_spill]] %s2810_s3 }
   0x5   :  { %2835 = sst [smem:[#allocation32_spill]] %s2811_s4 }
   0x6   :  { %2836 = sst [smem:[#allocation33_spill]] %s2812_s5 }
   0x7   :  { %26 = vsyncpa [#allocation3], 0 }
   0x8   :  { %27 = vsyncpa [#allocation5], 0 }
   0x9   :  { %28 = vsyncpa [#allocation8], 0 }
   0xa   :  { %29 = vsyncpa [#allocation11], 0 }
   0xb   :  { %30 = vsyncpa [#allocation14], 0 }
   0xc   :  { %31 = vsyncpa [#allocation17], 0  ;;  %s2837_s26 = sld [smem:[#allocation33_spill]] }
  0x12   :  { %s57_s27 = sshll.u32 %s2837_s26, 4  ;;  %s58_s27 = int_to_ptr.hbm [resolvable:$true] %s57_s27 }
  0x13   :  { %32 = vsyncpa [#allocation20], 0  ;;  %s2223_s3 = smov [#allocation4]   ;;  %s81_s4 = sshll.u32 %s2815_s8, 4  ;;  %s82_s4 = int_to_ptr.hbm [resolvable:$true] %s81_s4 }
  0x14   :  { %s59_s28 = sshll.u32 %s2223_s3, 4  ;;  %s2224_s30 = smov [#allocation7]   ;;  %s60_s28 = int_to_ptr.vmem [resolvable:$true] %s59_s28 }
  0x15   :  { %62 = dma.hbm_to_vmem [thread:$0]  %s58_s27, 16, %s60_s28, [#allocation5]  }
  0x16   :  { %s83_s5 = sshll.u32 %s2224_s30, 4  ;;  %s107_s1 = sshll.u32 %s2818_s11, 4  ;;  %s84_s5 = int_to_ptr.vmem [resolvable:$true] %s83_s5  ;;  %s108_s1 = int_to_ptr.hbm [resolvable:$true] %s107_s1 }
  0x17   :  { %86 = dma.hbm_to_vmem [thread:$0]  %s82_s4, 16, %s84_s5, [#allocation8]  }
  0x18   :  { %s133_s25 = sshll.u32 %s2821_s14, 4  ;;  %s2225_s26 = smov [#allocation10]   ;;  %s134_s25 = int_to_ptr.hbm [resolvable:$true] %s133_s25 }
  0x19   :  { %s109_s3 = sshll.u32 %s2225_s26, 4  ;;  %s2226_s8 = smov [#allocation13]   ;;  %s110_s3 = int_to_ptr.vmem [resolvable:$true] %s109_s3 }
  0x1a   :  { %112 = dma.hbm_to_vmem [thread:$0]  %s108_s1, 16, %s110_s3, [#allocation11]  }
  0x1b   :  { %s135_s27 = sshll.u32 %s2226_s8, 4  ;;  %s156_s11 = sshll.u32 %s2823_s16, 4  ;;  %s136_s27 = int_to_ptr.vmem [resolvable:$true] %s135_s27  ;;  %s157_s11 = int_to_ptr.hbm [resolvable:$true] %s156_s11 }
  0x1c   :  { %138 = dma.hbm_to_vmem [thread:$0]  %s134_s25, 16, %s136_s27, [#allocation14]  }
  0x1d   :  { %s2227_s0 = smov [#allocation16]   ;;  %s2838_s14 = sld [smem:[#allocation30_spill]] }
  0x1e   :  { %s158_s4 = sshll.u32 %s2227_s0, 4  ;;  %s2228_s23 = smov 128   ;;  %s159_s4 = int_to_ptr.vmem [resolvable:$true] %s158_s4 }
  0x1f   :  { %s2229_s24 = smov 8   ;;  %s2230_s1 = smov [#allocation2]  }
  0x20   :  { %164 = dma.hbm_to_vmem [thread:$0]  %s157_s11, 1024, %s159_s4, [#allocation17], %s2228_s23, %s2228_s23, %s2229_s24  }
  0x21   :  { %s44_s2 = sshll.u32 %s2230_s1, 4  ;;  %s68_s16 = sshll.u32 %s2813_s6, 4  ;;  %s45_s2 = int_to_ptr.vmem [resolvable:$true] %s44_s2  ;;  %s69_s16 = int_to_ptr.hbm [resolvable:$true] %s68_s16 }
  0x22   :  { %s93_s27 = sshll.u32 %s2817_s10, 4  ;;  %s2231_s28 = smov [#allocation6]   ;;  %s94_s27 = int_to_ptr.hbm [resolvable:$true] %s93_s27 }
  0x23   :  { %s42_s22 = sshll.u32 %s2838_s14, 4  ;;  %s70_s29 = sshll.u32 %s2231_s28, 4  ;;  %s43_s22 = int_to_ptr.hbm [resolvable:$true] %s42_s22  ;;  %s71_s29 = int_to_ptr.vmem [resolvable:$true] %s70_s29 }
  0x24   :  { %47 = dma.hbm_to_vmem [thread:$0]  %s43_s22, 16, %s45_s2, [#allocation3]  }
  0x25   :  { %73 = dma.hbm_to_vmem [thread:$0]  %s69_s16, 64, %s71_s29, [#allocation5]  }
  0x26   :  { %s2232_s11 = smov [#allocation9]   ;;  %s119_s5 = sshll.u32 %s2820_s13, 4  ;;  %s120_s5 = int_to_ptr.hbm [resolvable:$true] %s119_s5 }
  0x27   :  { %s95_s0 = sshll.u32 %s2232_s11, 4  ;;  %s143_s10 = sshll.u32 %s2822_s15, 4  ;;  %s96_s0 = int_to_ptr.vmem [resolvable:$true] %s95_s0  ;;  %s144_s10 = int_to_ptr.hbm [resolvable:$true] %s143_s10 }
  0x28   :  { %101 = dma.hbm_to_vmem [thread:$0]  %s94_s27, 1024, %s96_s0, [#allocation8], %s2228_s23, %s2228_s23, %s2229_s24  }
  0x29   :  { %s2233_s22 = smov [#allocation12]   ;;  %s2234_s2 = smov [#allocation15]  }
  0x2a   :  { %s121_s1 = sshll.u32 %s2233_s22, 4  ;;  %s145_s13 = sshll.u32 %s2234_s2, 4  ;;  %s122_s1 = int_to_ptr.vmem [resolvable:$true] %s121_s1  ;;  %s146_s13 = int_to_ptr.vmem [resolvable:$true] %s145_s13 }
  0x2b   :  { %127 = dma.hbm_to_vmem [thread:$0]  %s120_s5, 1024, %s122_s1, [#allocation11], %s2228_s23, %s2228_s23, %s2229_s24  }
  0x2c   :  { %s2235_s25 = smov 64   ;;  %s2236_s26 = smov 4  }
  0x2d   :  { %151 = dma.hbm_to_vmem [thread:$0]  %s144_s10, 512, %s146_s13, [#allocation14], %s2235_s25, %s2235_s25, %s2236_s26  }
  0x2e   :  { %s170_s15 = sshll.u32 %s2824_s17, 4  ;;  %s2237_s8 = smov [#allocation18]   ;;  %s171_s15 = int_to_ptr.hbm [resolvable:$true] %s170_s15 }
  0x2f   :  { %s172_s27 = sshll.u32 %s2237_s8, 4  ;;  %s185_s23 = sshll.u32 %s2827_s20, 4  ;;  %s173_s27 = int_to_ptr.vmem [resolvable:$true] %s172_s27  ;;  %s186_s23 = int_to_ptr.hbm [resolvable:$true] %s185_s23 }
  0x30   :  { %175 = dma.hbm_to_vmem [thread:$0]  %s171_s15, 16, %s173_s27, [#allocation17]  }
  0x31   :  { %s2238_s24 = smov [#allocation19]  }
  0x32   :  { %s187_s11 = sshll.u32 %s2238_s24, 4  ;;  %s188_s11 = int_to_ptr.vmem [resolvable:$true] %s187_s11 }
  0x33   :  { %190 = dma.hbm_to_vmem [thread:$0]  %s186_s23, 16, %s188_s11, [#allocation20]  }
  0x34   :  { %2209 = dma.done.wait [#allocation3], 16  }
  0x35   :  { %2210 = vsyncadd [#allocation3], 4294967280 }
  0x36   :  { %2211 = dma.done.wait [#allocation5], 80  }
  0x37   :  { %2212 = vsyncadd [#allocation5], 4294967216 }
  0x38   :  { %2213 = dma.done.wait [#allocation8], 1040  }
  0x39   :  { %2214 = vsyncadd [#allocation8], 4294966256 }
  0x3a   :  { %2215 = dma.done.wait [#allocation11], 1040  }
  0x3b   :  { %2216 = vsyncadd [#allocation11], 4294966256 }
  0x3c   :  { %2217 = dma.done.wait [#allocation14], 528  }
  0x3d   :  { %2218 = vsyncadd [#allocation14], 4294966768 }
  0x3e   :  { %2219 = dma.done.wait [#allocation17], 1040  }
  0x3f   :  { %2220 = vsyncadd [#allocation17], 4294966256 }
  0x40   :  { %2221 = dma.done.wait [#allocation20], 16  }
  0x41   :  { %2222 = vsyncadd [#allocation20], 4294967280  ;;  %s2839_s0 = sld [smem:[#allocation29_spill]]  ;;  %vm278_vm0 = vcmask 523264   ;;  %v1914_v6 = vld [vmem:[#allocation2] ss:$0 sm:$0xff] }
  0x42   :  { %s2840_s2 = sld [smem:[#allocation28_spill]]  ;;  %s2239_s13 = smov 96   ;;  %vm301_vm1 = vcmask 1040384   ;;  %vm313_vm2 = vcmask 261120   ;;  %v1812_v49 = vld [vmem:[%s2814_s7 + $0x34] sm:$0xf] }
  0x43   :  { %s2841_s3 = sld [smem:[#allocation32_spill]]  ;;  %s2240_s16 = smov 32   ;;  %v1516_v50 = vld [vmem:[%s2814_s7 + $0x38] sm:$0xf0]  ;;  %v1810_v52 = vld [vmem:[%s2814_s7 + $0x24] sm:$0xf] }
  0x44   :  { %v1519_v51 = vor.u32 %v1812_v49, %v1516_v50  ;;  %v1508_v53 = vld [vmem:[%s2814_s7 + $0x28] sm:$0xf0]  ;;  %vm401_vm3 = vcmask 1041408   ;;  %vm403_vm4 = vcmask 1043456   ;;  %v1514_v57 = vld [vmem:[%s2814_s7 + $0x30] sm:$0xf] }
  0x45   :  { %v1511_v54 = vor.u32 %v1810_v52, %v1508_v53  ;;  %v1813_v58 = vld [vmem:[%s2814_s7 + $0x34] sm:$0xf0]  ;;  %vm415_vm5 = vcmask 1042432   ;;  %v1506_v63 = vld [vmem:[%s2814_s7 + $0x20] sm:$0xf]  ;;  %s2842_s27 = sld [smem:[#allocation31_spill]] }
  0x46   :  { %v1515_v62 = vor.u32 %v1813_v58, %v1514_v57  ;;  %vm411_vm6 = vcmask 48128   ;;  %vm527_vm7 = vcmask 1045504   ;;  %vm523_vm8 = vcmask 97280   ;;  %v1525_v50 = vld [vmem:[#allocation9] sm:$0xf] }
  0x47   :  { %v1797_v0 = vld [vmem:[%s2839_s0 + $0x18] sm:$0xff]  ;;  %v1796_v1 = vld [vmem:[%s2839_s0 + $0x10] sm:$0xff]  ;;  %v1795_v2 = vld [vmem:[%s2839_s0 + $0x8] sm:$0xff]  ;;  %vm640_vm9 = vcmask 195584   ;;  %vm772_vm10 = vcmask 392192   ;;  %vm950_vm11 = vcmask 785408  }
  0x48   :  { %286 = vmatpush.bf16.msra.mxu0 %v1797_v0  ;;  %v1794_v3 = vld [vmem:[%s2839_s0] sm:$0xff]  ;;  %v1811_v0 = vld [vmem:[%s2814_s7 + $0x24] sm:$0xf0]  ;;  %v1814_v52 = vld [vmem:[#allocation9 + $0x4] sm:$0xf] }
  0x49   :  { %v240_v4 = vld [vmem:[%s2840_s2] sm:$0x3]  ;;  %v1479_v12 = vld [vmem:[%s2841_s3 + $0x30] sm:$0xf]  ;;  %v1805_v13 = vld [vmem:[%s2841_s3 + $0x34] sm:$0xf0] }
  0x4a   :  { %v241_v5 = vpack.c.bf16 %v240_v4, %v240_v4  ;;  %v1804_v14 = vld [vmem:[%s2841_s3 + $0x34] sm:$0xf]  ;;  %v1480_v15 = vor.u32 %v1805_v13, %v1479_v12  ;;  %v1481_v16 = vld [vmem:[%s2841_s3 + $0x38] sm:$0xf0]  ;;  %v1471_v17 = vld [vmem:[%s2841_s3 + $0x20] sm:$0xf] }
  0x4b   :  { %v1803_v18 = vld [vmem:[%s2841_s3 + $0x24] sm:$0xf0]  ;;  %v1484_v19 = vor.u32 %v1804_v14, %v1481_v16  ;;  %v1802_v20 = vld [vmem:[%s2841_s3 + $0x24] sm:$0xf]  ;;  %v1473_v21 = vld [vmem:[%s2841_s3 + $0x28] sm:$0xf0] }
  0x4c   :  { %287 = vmatpush.bf16.msra.mxu0 %v1796_v1  ;;  %371 = vmatpush.bf16.msra.mxu1 %v1480_v15  ;;  %v1472_v22 = vor.u32 %v1803_v18, %v1471_v17  ;;  %v1476_v23 = vor.u32 %v1802_v20, %v1473_v21  ;;  %v1463_v24 = vld [vmem:[%s2841_s3 + $0x10] sm:$0xf]  ;;  %v1801_v25 = vld [vmem:[%s2841_s3 + $0x14] sm:$0xf0]  ;;  %v1800_v26 = vld [vmem:[%s2841_s3 + $0x14] sm:$0xf] }
  0x4d   :  { %384 = vmatpush.bf16.msra.mxu2 %v1484_v19  ;;  %v1465_v27 = vld [vmem:[%s2841_s3 + $0x18] sm:$0xf0]  ;;  %v1464_v28 = vor.u32 %v1801_v25, %v1463_v24  ;;  %v1455_v33 = vld [vmem:[%s2841_s3] sm:$0xf]  ;;  %v1799_v34 = vld [vmem:[%s2841_s3 + $0x4] sm:$0xf0] }
  0x4e   :  { %v1468_v29 = vor.u32 %v1800_v26, %v1465_v27  ;;  %v1798_v35 = vld [vmem:[%s2841_s3 + $0x4] sm:$0xf]  ;;  %v1456_v36 = vor.u32 %v1799_v34, %v1455_v33  ;;  %v1457_v37 = vld [vmem:[%s2841_s3 + $0x8] sm:$0xf0]  ;;  %v1498_v4 = vld [vmem:[%s2814_s7 + $0x10] sm:$0xf] }
  0x4f   :  { %v1460_v38 = vor.u32 %v1798_v35, %v1457_v37  ;;  %v1806_v12 = vld [vmem:[%s2814_s7 + $0x4] sm:$0xf]  ;;  %v1492_v14 = vld [vmem:[%s2814_s7 + $0x8] sm:$0xf0]  ;;  %v1915_v16 = vld [vmem:[#allocation4] ss:$0 sm:$0xff] }
  0x50   :  { %288 = vmatpush.bf16.msra.mxu0 %v1795_v2  ;;  %372 = vmatpush.bf16.msra.mxu1 %v1472_v22  ;;  %v405_v2 = vld [vmem:[%s2842_s27] sm:$0x3]  ;;  %v1495_v15 = vor.u32 %v1806_v12, %v1492_v14  ;;  %v1549_v27 = vld [vmem:[#allocation9 + $0x30] sm:$0xf]  ;;  %v1819_v33 = vld [vmem:[#allocation9 + $0x24] sm:$0xf0] }
  0x51   :  { %385 = vmatpush.bf16.msra.mxu2 %v1476_v23  ;;  %v1818_v35 = vld [vmem:[#allocation9 + $0x24] sm:$0xf]  ;;  %v1828_v14 = vld [vmem:[#allocation12 + $0x24] sm:$0xf0] }
  0x54   :  { %289 = vmatpush.bf16.msra.mxu0 %v1794_v3  ;;  %373 = vmatpush.bf16.msra.mxu1 %v1464_v28  ;;  %v1507_v3 = vor.u32 %v1811_v0, %v1506_v63  ;;  %v1821_v28 = vld [vmem:[#allocation9 + $0x34] sm:$0xf0] }
  0x55   :  { %386 = vmatpush.bf16.msra.mxu2 %v1468_v29  ;;  %v1820_v29 = vld [vmem:[#allocation9 + $0x34] sm:$0xf] }
  0x57   :  { %1452 = vmatmul.msk.bf16.vlgmr.msra.gmra.mxu0 %vm278_vm0, %v241_v5  ;;  %v1809_v5 = vld [vmem:[%s2814_s7 + $0x14] sm:$0xf0] }
  0x58   :  { %374 = vmatpush.bf16.msra.mxu1 %v1456_v36  ;;  %502 = vmatpush.bf16.msrb.mxu0 %v1519_v51  ;;  %v1543_v36 = vld [vmem:[#allocation9 + $0x28] sm:$0xf0]  ;;  %v1815_v51 = vld [vmem:[#allocation9 + $0x4] sm:$0xf0] }
  0x59   :  { %387 = vmatpush.bf16.msra.mxu2 %v1460_v38  ;;  %v1546_v38 = vor.u32 %v1818_v35, %v1543_v36  ;;  %v1526_v53 = vor.u32 %v1815_v51, %v1525_v50  ;;  %v1831_v50 = vld [vmem:[%s2819_s12] sm:$0xff]  ;;  %v1832_v51 = vld [vmem:[%s2819_s12 + $0x8] sm:$0xff] }
  0x5c   :  { %503 = vmatpush.bf16.msrb.mxu0 %v1511_v54  ;;  %v1527_v54 = vld [vmem:[#allocation9 + $0x8] sm:$0xf0] }
  0xd4   :  { %v291_v7 = vpop.f32.mrf.mxu0 }
  0xd5   :  { %v292_v8 = vadd.f32 %v1914_v6, %v291_v7  ;;  %v1808_v6 = vld [vmem:[%s2814_s7 + $0x14] sm:$0xf]  ;;  %v1499_v7 = vor.u32 %v1809_v5, %v1498_v4 }
  0xd7   :  { %v295_v9 = vmax.f32 %v292_v8, 0.0  ;;  %v1500_v8 = vld [vmem:[%s2814_s7 + $0x18] sm:$0xf0] }
  0xd9   :  { %305 = vrot.lane.b32.xlu0 %v295_v9, %s2239_s13  ;;  %v297_v11 = vrot.slane %v295_v9, 7  ;;  %v303_v30 = vrot.slane %v295_v9, 1 }
  0xdc   :  { %v293_v10 = vpop.f32.mrf.mxu0 }
  0xdd   :  { %v1490_v10 = vld [vmem:[%s2814_s7] sm:$0xf] }
  0xe1   :  { %298 = vrot.lane.b32.xlu0 %v297_v11, %s2239_s13  ;;  %v1807_v11 = vld [vmem:[%s2814_s7 + $0x4] sm:$0xf0] }
  0xe2   :  { %v1491_v13 = vor.u32 %v1807_v11, %v1490_v10  ;;  %v1590_v11 = vld [vmem:[#allocation12 + $0x38] sm:$0xf0] }
 0x14b   :  { %v306_v31 = vpop.permute.xlu0 %305 }
 0x14c   :  { %v308_v32 = vsel %vm301_vm1, %v303_v30, %v306_v31  ;;  %v1550_v30 = vor.u32 %v1821_v28, %v1549_v27  ;;  %v1551_v31 = vld [vmem:[#allocation9 + $0x38] sm:$0xf0]  ;;  %v1823_v27 = vld [vmem:[#allocation12 + $0x4] sm:$0xf] }
 0x14d   :  { %310 = vrot.lane.b32.xlu1 %v308_v32, %s2240_s16  ;;  %v1541_v32 = vld [vmem:[#allocation9 + $0x20] sm:$0xf]  ;;  %v1554_v34 = vor.u32 %v1820_v29, %v1551_v31  ;;  %v1566_v29 = vld [vmem:[#allocation12 + $0x8] sm:$0xf0] }
 0x14e   :  { %601 = vmatpush.bf16.msrb.mxu2 %v1550_v30  ;;  %v1542_v37 = vor.u32 %v1819_v33, %v1541_v32  ;;  %v1569_v30 = vor.u32 %v1823_v27, %v1566_v29  ;;  %v1917_v32 = vld [vmem:[#allocation10] ss:$0 sm:$0xff] }
 0x152   :  { %602 = vmatpush.bf16.msrb.mxu2 %v1542_v37 }
 0x153   :  { %v299_v39 = vpop.permute.xlu0 %298 }
 0x154   :  { %v302_v40 = vsel %vm301_vm1, %v295_v9, %v299_v39  ;;  %v1503_v9 = vor.u32 %v1808_v6, %v1500_v8  ;;  %v1822_v6 = vld [vmem:[%s2816_s9] sm:$0xff] }
 0x155   :  { %v1830_v8 = vld [vmem:[#allocation12 + $0x34] sm:$0xf0] }
 0x156   :  { %504 = vmatpush.bf16.msrb.mxu0 %v1503_v9  ;;  %v1829_v9 = vld [vmem:[#allocation12 + $0x34] sm:$0xf] }
 0x157   :  { %v1593_v12 = vor.u32 %v1829_v9, %v1590_v11 }
 0x15a   :  { %505 = vmatpush.bf16.msrb.mxu0 %v1495_v15  ;;  %v1827_v15 = vld [vmem:[#allocation12 + $0x24] sm:$0xf] }
 0x1bf   :  { %v311_v41 = vpop.permute.xlu1 %310 }
 0x1c0   :  { %v314_v42 = vsel %vm313_vm2, %v302_v40, %v311_v41 }
 0x1c1   :  { %v315_v43 = vpack.c.bf16 %v314_v42, %v314_v42 }
 0x1c3   :  { %1485 = vmatmul.msk.bf16.vlgmr.msra.gmra.mxu1 %vm278_vm0, %v315_v43  ;;  %1486 = vmatmul.msk.bf16.vlgmr.msra.gmra.mxu2 %vm278_vm0, %v315_v43  ;;  %v517_v43 = vld [vmem:[#allocation6] sm:$0xf] }
 0x240   :  { %v376_v44 = vpop.f32.mrf.mxu1 }
 0x241   :  { %v394_v45 = vrot.slane %v376_v44, 6 }
 0x243   :  { %395 = vrot.lane.b32.xlu1 %v394_v45, %s2235_s25  ;;  %v1817_v45 = vld [vmem:[#allocation9 + $0x14] sm:$0xf0] }
 0x246   :  { %v389_v46 = vpop.f32.mrf.mxu2 }
 0x247   :  { %v399_v55 = vrot.slane %v389_v46, 4  ;;  %v1816_v46 = vld [vmem:[#allocation9 + $0x14] sm:$0xf] }
 0x248   :  { %v378_v47 = vpop.f32.mrf.mxu1 }
 0x24e   :  { %v391_v48 = vpop.f32.mrf.mxu2 }
 0x24f   :  { %v1535_v48 = vld [vmem:[#allocation9 + $0x18] sm:$0xf0] }
 0x250   :  { %v1538_v49 = vor.u32 %v1816_v46, %v1535_v48 }
 0x2b5   :  { %v396_v56 = vpop.permute.xlu1 %395 }
 0x2b6   :  { %v402_v59 = vsel %vm401_vm3, %v376_v44, %v396_v56  ;;  %v1533_v44 = vld [vmem:[#allocation9 + $0x10] sm:$0xf]  ;;  %v1916_v56 = vld [vmem:[#allocation7] ss:$0 sm:$0xff] }
 0x2b7   :  { %v404_v60 = vsel %vm403_vm4, %v402_v59, %v399_v55  ;;  %v1534_v47 = vor.u32 %v1817_v45, %v1533_v44  ;;  %v1530_v55 = vor.u32 %v1814_v52, %v1527_v54  ;;  %v1632_v52 = vld [vmem:[#allocation16 + $0x30] sm:$0xf]  ;;  %v1839_v54 = vld [vmem:[#allocation16 + $0x34] sm:$0xf] }
 0x2b8   :  { %v406_v61 = vpack.c.bf16 %v404_v60, %v404_v60 }
 0x2b9   :  { %603 = vmatpush.bf16.msrb.mxu2 %v1534_v47 }
 0x2ba   :  { %v417_v1 = vsel %vm415_vm5, %v406_v61, 0 }
 0x2bb   :  { %426 = vmatpush.bf16.msra.mxu3 %v417_v1 }
 0x2bd   :  { %604 = vmatpush.bf16.msrb.mxu2 %v1526_v53  ;;  %v1840_v53 = vld [vmem:[#allocation16 + $0x34] sm:$0xf0] }
 0x2be   :  { %1487 = vmatmul.msk.bf16.vlgmr.msra.gmra.mxu3 %vm411_vm6, %v405_v2 }
 0x2bf   :  { %489 = vmatpush.bf16.msrb.mxu3 %v1515_v62 }
 0x2c1   :  { %733 = vmatpush.bf16.msra.mxu2 %v1593_v12 }
 0x2c3   :  { %490 = vmatpush.bf16.msrb.mxu3 %v1507_v3 }
 0x2c7   :  { %491 = vmatpush.bf16.msrb.mxu3 %v1499_v7  ;;  %v1588_v7 = vld [vmem:[#allocation12 + $0x30] sm:$0xf] }
 0x2c8   :  { %v1589_v10 = vor.u32 %v1830_v8, %v1588_v7  ;;  %v1834_v7 = vld [vmem:[#allocation16 + $0x4] sm:$0xf0]  ;;  %v1833_v8 = vld [vmem:[#allocation16 + $0x4] sm:$0xf] }
 0x2cb   :  { %492 = vmatpush.bf16.msrb.mxu3 %v1491_v13  ;;  %v1580_v13 = vld [vmem:[#allocation12 + $0x20] sm:$0xf] }
 0x2cf   :  { %614 = vmatpush.bf16.msra.mxu3 %v1554_v34 }
 0x2d3   :  { %615 = vmatpush.bf16.msra.mxu3 %v1546_v38 }
 0x2d7   :  { %616 = vmatpush.bf16.msra.mxu3 %v1538_v49 }
 0x2db   :  { %617 = vmatpush.bf16.msra.mxu3 %v1530_v55  ;;  %v1633_v55 = vor.u32 %v1840_v53, %v1632_v52  ;;  %v1844_v52 = vld [vmem:[#allocation15 + $0x18] sm:$0xff] }
 0x2dc   :  { %v1700_v53 = vld [vmem:[%s2826_s19 + $0x48] sm:$0xf] }
 0x341   :  { %v428_v17 = vpop.f32.mrf.mxu3 }
 0x342   :  { %v429_v18 = vadd.f32 %v1915_v16, %v428_v17  ;;  %v1581_v16 = vor.u32 %v1828_v14, %v1580_v13  ;;  %v1582_v17 = vld [vmem:[#allocation12 + $0x28] sm:$0xf0]  ;;  %v1918_v13 = vld [vmem:[#allocation13] ss:$0 sm:$0xff] }
 0x344   :  { %v432_v19 = vmax.f32 %v429_v18, 0.0  ;;  %v1585_v18 = vor.u32 %v1827_v15, %v1582_v17 }
 0x346   :  { %v433_v20 = vpack.c.bf16 %v432_v19, %v432_v19  ;;  %734 = vmatpush.bf16.msra.mxu2 %v1585_v18  ;;  %v1572_v19 = vld [vmem:[#allocation12 + $0x10] sm:$0xf] }
 0x348   :  { %1520 = vmatmul.msk.bf16.vlgmr.msrb.gmra.mxu3 %vm278_vm0, %v433_v20  ;;  %1521 = vmatmul.msk.bf16.vlgmr.msrb.gmra.mxu0 %vm278_vm0, %v433_v20  ;;  %v1826_v20 = vld [vmem:[#allocation12 + $0x14] sm:$0xf0] }
 0x349   :  { %v430_v21 = vpop.f32.mrf.mxu3 }
 0x34a   :  { %v1825_v21 = vld [vmem:[#allocation12 + $0x14] sm:$0xf] }
 0x3c5   :  { %v507_v22 = vpop.f32.mrf.mxu0 }
 0x3cb   :  { %v494_v23 = vpop.f32.mrf.mxu3 }
 0x3cc   :  { %v512_v24 = vrot.slane %v494_v23, 4 }
 0x3cd   :  { %v509_v25 = vpop.f32.mrf.mxu0 }
 0x3ce   :  { %513 = vrot.lane.b32.xlu2 %v512_v24, %s2235_s25  ;;  %v1564_v25 = vld [vmem:[#allocation12] sm:$0xf] }
 0x3d3   :  { %v496_v26 = vpop.f32.mrf.mxu3 }
 0x3d4   :  { %v1824_v26 = vld [vmem:[#allocation12 + $0x4] sm:$0xf0] }
 0x3d5   :  { %v1565_v28 = vor.u32 %v1824_v26, %v1564_v25 }
 0x428   :  { %v514_v39 = vpop.permute.xlu2 %513 }
 0x429   :  { %v516_v40 = vsel %vm403_vm4, %v494_v23, %v514_v39  ;;  %v1574_v23 = vld [vmem:[#allocation12 + $0x18] sm:$0xf0] }
 0x42a   :  { %v518_v41 = vpack.c.bf16 %v507_v22, %v516_v40  ;;  %v1573_v22 = vor.u32 %v1826_v20, %v1572_v19  ;;  %v1577_v24 = vor.u32 %v1825_v21, %v1574_v23 }
 0x42c   :  { %v529_v42 = vsel %vm527_vm7, %v518_v41, 0  ;;  %735 = vmatpush.bf16.msra.mxu2 %v1577_v24 }
 0x42d   :  { %538 = vmatpush.bf16.msrb.mxu1 %v529_v42 }
 0x430   :  { %1522 = vmatmul.msk.bf16.vlgmr.msrb.gmra.mxu1 %vm523_vm8, %v517_v43  ;;  %736 = vmatpush.bf16.msra.mxu2 %v1569_v30 }
 0x431   :  { %719 = vmatpush.bf16.msra.mxu1 %v1589_v10  ;;  %v1610_v10 = vld [vmem:[#allocation16 + $0x8] sm:$0xf0] }
 0x432   :  { %v1613_v11 = vor.u32 %v1833_v8, %v1610_v10  ;;  %v1846_v8 = vld [vmem:[%s2826_s19 + $0x8] sm:$0xf0] }
 0x435   :  { %720 = vmatpush.bf16.msra.mxu1 %v1581_v16 }
 0x439   :  { %721 = vmatpush.bf16.msra.mxu1 %v1573_v22 }
 0x43d   :  { %722 = vmatpush.bf16.msra.mxu1 %v1565_v28 }
 0x4ad   :  { %v540_v57 = vpop.f32.mrf.mxu1 }
 0x4ae   :  { %v541_v58 = vadd.f32 %v1916_v56, %v540_v57  ;;  %v1634_v56 = vld [vmem:[#allocation16 + $0x38] sm:$0xf0] }
 0x4af   :  { %v1637_v57 = vor.u32 %v1839_v54, %v1634_v56  ;;  %v1855_v54 = vld [vmem:[%s2826_s19 + $0x50] sm:$0xf0] }
 0x4b0   :  { %v544_v59 = vmax.f32 %v541_v58, 0.0  ;;  %v1624_v58 = vld [vmem:[#allocation16 + $0x20] sm:$0xf]  ;;  %v1701_v56 = vor.u32 %v1855_v54, %v1700_v53 }
 0x4b1   :  { %881 = vmatpush.bf16.msrb.mxu1 %v1637_v57  ;;  %v1856_v57 = vld [vmem:[%s2826_s19 + $0x58] sm:$0xf0] }
 0x4b2   :  { %v545_v60 = vpack.c.bf16 %v544_v59, %v544_v59  ;;  %v1838_v59 = vld [vmem:[#allocation16 + $0x24] sm:$0xf0] }
 0x4b4   :  { %1555 = vmatmul.msk.bf16.vlgmr.msrb.gmra.mxu2 %vm278_vm0, %v545_v60  ;;  %1556 = vmatmul.msk.bf16.vlgmr.msra.gmra.mxu3 %vm278_vm0, %v545_v60  ;;  %v1837_v60 = vld [vmem:[#allocation16 + $0x24] sm:$0xf] }
 0x4b5   :  { %v542_v61 = vpop.f32.mrf.mxu1 }
 0x4b6   :  { %v1625_v61 = vor.u32 %v1838_v59, %v1624_v58  ;;  %v1688_v59 = vld [vmem:[%s2826_s19 + $0x30] sm:$0xf] }
 0x537   :  { %v606_v62 = vpop.f32.mrf.mxu2  ;;  %v619_v63 = vpop.f32.mrf.mxu3 }
 0x538   :  { %v630_v0 = vpack.c.bf16 %v619_v63, %v619_v63  ;;  %624 = vrot.lane.b32.xlu2 %v606_v62, %s2235_s25 }
 0x53a   :  { %v645_v1 = vsel %vm403_vm4, %v630_v0, 0  ;;  %v1616_v0 = vld [vmem:[#allocation16 + $0x10] sm:$0xf] }
 0x53b   :  { %653 = vmatpush.bf16.msra.mxu0 %v645_v1  ;;  %v1836_v1 = vld [vmem:[#allocation16 + $0x14] sm:$0xf0] }
 0x53f   :  { %v608_v2 = vpop.f32.mrf.mxu2  ;;  %v621_v3 = vpop.f32.mrf.mxu3 }
 0x540   :  { %v1835_v2 = vld [vmem:[#allocation16 + $0x14] sm:$0xf]  ;;  %v1617_v3 = vor.u32 %v1836_v1, %v1616_v0  ;;  %v1676_v1 = vld [vmem:[%s2826_s19 + $0x18] sm:$0xf] }
 0x592   :  { %v625_v4 = vpop.permute.xlu2 %624 }
 0x593   :  { %v629_v5 = vpack.c.bf16 %v625_v4, %v606_v62  ;;  %v1626_v62 = vld [vmem:[#allocation16 + $0x28] sm:$0xf0]  ;;  %v1618_v4 = vld [vmem:[#allocation16 + $0x18] sm:$0xf0] }
 0x594   :  { %v1629_v63 = vor.u32 %v1837_v60, %v1626_v62  ;;  %v1852_v60 = vld [vmem:[%s2826_s19 + $0x38] sm:$0xf0] }
 0x595   :  { %654 = vmatpush.bf16.msra.mxu0 %v629_v5  ;;  %v1621_v5 = vor.u32 %v1835_v2, %v1618_v4  ;;  %v1689_v62 = vor.u32 %v1852_v60, %v1688_v59  ;;  %v1849_v2 = vld [vmem:[%s2826_s19 + $0x20] sm:$0xf0] }
 0x596   :  { %882 = vmatpush.bf16.msrb.mxu1 %v1629_v63  ;;  %v1853_v63 = vld [vmem:[%s2826_s19 + $0x40] sm:$0xf0]  ;;  %v1677_v4 = vor.u32 %v1849_v2, %v1676_v1 }
 0x598   :  { %1561 = vmatmul.msk.bf16.vlgmr.msra.gmra.mxu0 %vm640_vm9, %v1822_v6  ;;  %v1608_v6 = vld [vmem:[#allocation16] sm:$0xf] }
 0x599   :  { %862 = vmatpush.bf16.msrb.mxu0 %v1633_v55  ;;  %v1609_v9 = vor.u32 %v1834_v7, %v1608_v6  ;;  %v1708_v55 = vld [vmem:[%s2826_s19 + $0x50] sm:$0xf]  ;;  %v1664_v7 = vld [vmem:[%s2826_s19] sm:$0xf] }
 0x59a   :  { %883 = vmatpush.bf16.msrb.mxu1 %v1621_v5  ;;  %v1709_v58 = vor.u32 %v1856_v57, %v1708_v55  ;;  %v1850_v5 = vld [vmem:[%s2826_s19 + $0x28] sm:$0xf0]  ;;  %v1665_v10 = vor.u32 %v1846_v8, %v1664_v7 }
 0x59d   :  { %863 = vmatpush.bf16.msrb.mxu0 %v1625_v61  ;;  %v1696_v61 = vld [vmem:[%s2826_s19 + $0x38] sm:$0xf] }
 0x59e   :  { %884 = vmatpush.bf16.msrb.mxu1 %v1613_v11  ;;  %v1697_v0 = vor.u32 %v1853_v63, %v1696_v61  ;;  %v1847_v11 = vld [vmem:[%s2826_s19 + $0x10] sm:$0xf0] }
 0x5a1   :  { %864 = vmatpush.bf16.msrb.mxu0 %v1617_v3  ;;  %v1684_v3 = vld [vmem:[%s2826_s19 + $0x20] sm:$0xf] }
 0x5a2   :  { %v1685_v6 = vor.u32 %v1850_v5, %v1684_v3 }
 0x5a5   :  { %865 = vmatpush.bf16.msrb.mxu0 %v1609_v9  ;;  %v1672_v9 = vld [vmem:[%s2826_s19 + $0x8] sm:$0xf] }
 0x5a9   :  { %1100 = vmatpush.bf16.msra.mxu0 %v1701_v56 }
 0x5ad   :  { %1101 = vmatpush.bf16.msra.mxu0 %v1689_v62 }
 0x5b1   :  { %1102 = vmatpush.bf16.msra.mxu0 %v1677_v4 }
 0x5b5   :  { %1103 = vmatpush.bf16.msra.mxu0 %v1665_v10 }
 0x615   :  { %v656_v31 = vpop.f32.mrf.mxu0 }
 0x616   :  { %v657_v33 = vadd.f32 %v1917_v32, %v656_v31 }
 0x618   :  { %v661_v36 = vmax.f32 %v657_v33, 0.0 }
 0x61d   :  { %v658_v34 = vpop.f32.mrf.mxu0 }
 0x61e   :  { %v659_v35 = vadd.f32 %v1917_v32, %v658_v34 }
 0x620   :  { %v662_v37 = vmax.f32 %v659_v35, 0.0 }
 0x622   :  { %v663_v38 = vpack.c.bf16 %v662_v37, %v661_v36 }
 0x624   :  { %1594 = vmatmul.msk.bf16.vlgmr.msra.gmra.mxu1 %vm278_vm0, %v663_v38  ;;  %1595 = vmatmul.msk.bf16.vlgmr.msra.gmra.mxu2 %vm278_vm0, %v663_v38 }
 0x625   :  { %1158 = vmatpush.bf16.msra.mxu1 %v1709_v58 }
 0x629   :  { %1159 = vmatpush.bf16.msra.mxu1 %v1697_v0 }
 0x62d   :  { %1160 = vmatpush.bf16.msra.mxu1 %v1685_v6 }
 0x6a1   :  { %v724_v39 = vpop.f32.mrf.mxu1 }
 0x6a7   :  { %v738_v40 = vpop.f32.mrf.mxu2 }
 0x6a9   :  { %v726_v41 = vpop.f32.mrf.mxu1 }
 0x6aa   :  { %v1899_v42 = vpack.i.bf16 %v726_v41, %v724_v39  ;;  %v755_v49 = vpack.c.bf16 %v726_v41, %v724_v39 }
 0x6ac   :  { %1900 = vrot.lane.b32.xlu0 %v1899_v42, %s2235_s25 }
 0x6af   :  { %v740_v43 = vpop.f32.mrf.mxu2 }
 0x6b0   :  { %v757_v44 = vpack.c.bf16 %v740_v43, %v738_v40 }
 0x6b2   :  { %784 = vmatpush.bf16.msrb.mxu3 %v757_v44 }
 0x71e   :  { %v1901_v45 = vpop.permute.xlu0 %1900 }
 0x71f   :  { %v1903_v46 = vunpack.i.h.bf16 %v1901_v45  ;;  %v1902_v47 = vunpack.i.l.bf16 %v1901_v45 }
 0x721   :  { %v756_v48 = vpack.c.bf16 %v1903_v46, %v1902_v47 }
 0x723   :  { %785 = vmatpush.bf16.msrb.mxu3 %v756_v48 }
 0x727   :  { %786 = vmatpush.bf16.msrb.mxu3 %v755_v49  ;;  %v1841_v49 = vld [vmem:[#allocation15] sm:$0xff] }
 0x72a   :  { %1604 = vmatmul.msk.bf16.vlgmr.msrb.gmra.mxu3 %vm772_vm10, %v1831_v50  ;;  %v1842_v50 = vld [vmem:[#allocation15 + $0x8] sm:$0xff] }
 0x73a   :  { %1605 = vmatmul.msk.bf16.gmra.mxu3 %vm772_vm10, %v1832_v51  ;;  %v1843_v51 = vld [vmem:[#allocation15 + $0x10] sm:$0xff] }
 0x7ad   :  { %v788_v12 = vpop.f32.mrf.mxu3 }
 0x7ae   :  { %v789_v14 = vadd.f32 %v1918_v13, %v788_v12  ;;  %v1673_v12 = vor.u32 %v1847_v11, %v1672_v9 }
 0x7b0   :  { %v798_v17 = vmax.f32 %v789_v14, 0.0  ;;  %1161 = vmatpush.bf16.msra.mxu1 %v1673_v12  ;;  %v1919_v14 = vld [vmem:[#allocation18] ss:$0 sm:$0xff] }
 0x7b5   :  { %v790_v15 = vpop.f32.mrf.mxu3 }
 0x7b6   :  { %v791_v16 = vadd.f32 %v1918_v13, %v790_v15 }
 0x7b8   :  { %v799_v18 = vmax.f32 %v791_v16, 0.0 }
 0x7ba   :  { %v802_v19 = vpack.c.bf16 %v799_v18, %v798_v17 }
 0x7bc   :  { %1638 = vmatmul.msk.bf16.vlgmr.msrb.gmra.mxu0 %vm278_vm0, %v802_v19  ;;  %1640 = vmatmul.msk.bf16.vlgmr.msrb.gmra.mxu1 %vm278_vm0, %v802_v19 }
 0x7bd   :  { %v793_v20 = vpop.f32.mrf.mxu3 }
 0x7be   :  { %v794_v21 = vadd.f32 %v1918_v13, %v793_v20 }
 0x7c0   :  { %v800_v24 = vmax.f32 %v794_v21, 0.0 }
 0x7c5   :  { %v795_v22 = vpop.f32.mrf.mxu3 }
 0x7c6   :  { %v796_v23 = vadd.f32 %v1918_v13, %v795_v22  ;;  %v1854_v22 = vld [vmem:[%s2826_s19 + $0x4c] sm:$0xf] }
 0x7c8   :  { %v801_v25 = vmax.f32 %v796_v23, 0.0  ;;  %v1702_v23 = vld [vmem:[%s2826_s19 + $0x54] sm:$0xf0] }
 0x7ca   :  { %v803_v26 = vpack.c.bf16 %v801_v25, %v800_v24  ;;  %v1705_v24 = vor.u32 %v1854_v22, %v1702_v23 }
 0x7cc   :  { %1639 = vmatmul.msk.bf16.gmra.mxu0 %vm278_vm0, %v803_v26  ;;  %1641 = vmatmul.msk.bf16.gmra.mxu1 %vm278_vm0, %v803_v26 }
 0x7cd   :  { %1129 = vmatpush.bf16.msrb.mxu0 %v1705_v24 }
 0x839   :  { %v867_v27 = vpop.f32.mrf.mxu0  ;;  %v886_v28 = vpop.f32.mrf.mxu1 }
 0x841   :  { %v869_v29 = vpop.f32.mrf.mxu0  ;;  %v888_v30 = vpop.f32.mrf.mxu1 }
 0x842   :  { %v920_v31 = vpack.c.bf16 %v869_v29, %v867_v27  ;;  %v1909_v32 = vpack.i.bf16 %v869_v29, %v867_v27  ;;  %v924_v39 = vpack.c.bf16 %v888_v30, %v886_v28 }
 0x844   :  { %1910 = vrot.lane.b32.xlu2 %v1909_v32, %s2235_s25  ;;  %v1690_v32 = vld [vmem:[%s2826_s19 + $0x3c] sm:$0xf0] }
 0x849   :  { %v872_v33 = vpop.f32.mrf.mxu0  ;;  %v891_v34 = vpop.f32.mrf.mxu1 }
 0x851   :  { %v874_v35 = vpop.f32.mrf.mxu0  ;;  %v893_v36 = vpop.f32.mrf.mxu1 }
 0x852   :  { %v925_v37 = vpack.c.bf16 %v893_v36, %v891_v34  ;;  %v1904_v38 = vpack.i.bf16 %v874_v35, %v872_v33  ;;  %v921_v48 = vpack.c.bf16 %v874_v35, %v872_v33  ;;  %v1848_v33 = vld [vmem:[%s2826_s19 + $0x1c] sm:$0xf]  ;;  %v1678_v36 = vld [vmem:[%s2826_s19 + $0x24] sm:$0xf0] }
 0x854   :  { %965 = vmatpush.bf16.msrb.mxu2 %v925_v37  ;;  %1905 = vrot.lane.b32.xlu1 %v1904_v38, %s2235_s25  ;;  %v1681_v37 = vor.u32 %v1848_v33, %v1678_v36  ;;  %v1845_v38 = vld [vmem:[%s2826_s19 + $0x4] sm:$0xf] }
 0x858   :  { %966 = vmatpush.bf16.msrb.mxu2 %v924_v39  ;;  %v1666_v39 = vld [vmem:[%s2826_s19 + $0xc] sm:$0xf0] }
 0x89e   :  { %v1911_v40 = vpop.permute.xlu2 %1910 }
 0x89f   :  { %v1913_v44 = vunpack.i.h.bf16 %v1911_v40  ;;  %v1912_v45 = vunpack.i.l.bf16 %v1911_v40  ;;  %v1669_v40 = vor.u32 %v1845_v38, %v1666_v39  ;;  %v1758_v38 = vld [vmem:[%s2825_s18 + $0x48] sm:$0xf0] }
 0x8a1   :  { %v922_v47 = vpack.c.bf16 %v1913_v44, %v1912_v45 }
 0x8c6   :  { %v1906_v41 = vpop.permute.xlu1 %1905 }
 0x8c7   :  { %v1908_v42 = vunpack.i.h.bf16 %v1906_v41  ;;  %v1907_v43 = vunpack.i.l.bf16 %v1906_v41 }
 0x8c9   :  { %v923_v46 = vpack.c.bf16 %v1908_v42, %v1907_v43 }
 0x8cb   :  { %967 = vmatpush.bf16.msrb.mxu2 %v923_v46 }
 0x8cf   :  { %968 = vmatpush.bf16.msrb.mxu2 %v922_v47 }
 0x8d3   :  { %969 = vmatpush.bf16.msrb.mxu2 %v921_v48 }
 0x8d7   :  { %970 = vmatpush.bf16.msrb.mxu2 %v920_v31  ;;  %v1851_v31 = vld [vmem:[%s2826_s19 + $0x34] sm:$0xf] }
 0x8d8   :  { %v1693_v35 = vor.u32 %v1851_v31, %v1690_v32  ;;  %v1750_v31 = vld [vmem:[%s2825_s18 + $0x38] sm:$0xf0] }
 0x8da   :  { %1658 = vmatmul.msk.bf16.vlgmr.msrb.gmra.mxu2 %vm950_vm11, %v1841_v49  ;;  %1130 = vmatpush.bf16.msrb.mxu0 %v1693_v35 }
 0x8de   :  { %1131 = vmatpush.bf16.msrb.mxu0 %v1681_v37  ;;  %v1865_v37 = vld [vmem:[%s2825_s18 + $0x44] sm:$0xf] }
 0x8e2   :  { %1132 = vmatpush.bf16.msrb.mxu0 %v1669_v40  ;;  %v1761_v40 = vor.u32 %v1865_v37, %v1758_v38 }
 0x8ea   :  { %1659 = vmatmul.msk.bf16.gmra.mxu2 %vm950_vm11, %v1842_v50 }
 0x8fa   :  { %1660 = vmatmul.msk.bf16.gmra.mxu2 %vm950_vm11, %v1843_v51 }
 0x90a   :  { %1661 = vmatmul.msk.bf16.gmra.mxu2 %vm950_vm11, %v1844_v52 }
 0x95d   :  { %v972_v13 = vpop.f32.mrf.mxu2 }
 0x95e   :  { %v973_v15 = vadd.f32 %v1919_v14, %v972_v13 }
 0x960   :  { %v992_v18 = vmax.f32 %v973_v15, 0.0  ;;  %v1726_v15 = vld [vmem:[%s2825_s18 + $0x8] sm:$0xf0] }
 0x965   :  { %v974_v16 = vpop.f32.mrf.mxu2 }
 0x966   :  { %v975_v17 = vadd.f32 %v1919_v14, %v974_v16 }
 0x968   :  { %v993_v19 = vmax.f32 %v975_v17, 0.0 }
 0x96a   :  { %v1000_v20 = vpack.c.bf16 %v993_v19, %v992_v18 }
 0x96c   :  { %1710 = vmatmul.msk.bf16.vlgmr.msra.gmra.mxu0 %vm278_vm0, %v1000_v20  ;;  %1718 = vmatmul.msk.bf16.vlgmr.msra.gmra.mxu1 %vm278_vm0, %v1000_v20 }
 0x96d   :  { %v977_v21 = vpop.f32.mrf.mxu2 }
 0x96e   :  { %v978_v25 = vadd.f32 %v1919_v14, %v977_v21  ;;  %v1734_v21 = vld [vmem:[%s2825_s18 + $0x18] sm:$0xf0] }
 0x970   :  { %v994_v28 = vmax.f32 %v978_v25, 0.0  ;;  %v1861_v25 = vld [vmem:[%s2825_s18 + $0x24] sm:$0xf] }
 0x975   :  { %v979_v26 = vpop.f32.mrf.mxu2 }
 0x976   :  { %v980_v27 = vadd.f32 %v1919_v14, %v979_v26  ;;  %v1742_v26 = vld [vmem:[%s2825_s18 + $0x28] sm:$0xf0] }
 0x978   :  { %v995_v29 = vmax.f32 %v980_v27, 0.0  ;;  %v1745_v27 = vor.u32 %v1861_v25, %v1742_v26 }
 0x97a   :  { %v1001_v30 = vpack.c.bf16 %v995_v29, %v994_v28 }
 0x97c   :  { %1711 = vmatmul.msk.bf16.gmra.mxu0 %vm278_vm0, %v1001_v30  ;;  %1719 = vmatmul.msk.bf16.gmra.mxu1 %vm278_vm0, %v1001_v30 }
 0x97d   :  { %v982_v34 = vpop.f32.mrf.mxu2 }
 0x97e   :  { %v983_v41 = vadd.f32 %v1919_v14, %v982_v34 }
 0x980   :  { %v996_v44 = vmax.f32 %v983_v41, 0.0  ;;  %v1724_v41 = vld [vmem:[%s2825_s18] sm:$0xf] }
 0x985   :  { %v984_v42 = vpop.f32.mrf.mxu2 }
 0x986   :  { %v985_v43 = vadd.f32 %v1919_v14, %v984_v42  ;;  %v1858_v42 = vld [vmem:[%s2825_s18 + $0x4] sm:$0xf0] }
 0x988   :  { %v997_v45 = vmax.f32 %v985_v43, 0.0  ;;  %v1748_v43 = vld [vmem:[%s2825_s18 + $0x30] sm:$0xf] }
 0x98a   :  { %v1002_v46 = vpack.c.bf16 %v997_v45, %v996_v44  ;;  %v1864_v44 = vld [vmem:[%s2825_s18 + $0x34] sm:$0xf0]  ;;  %v1867_v45 = vld [vmem:[%s2825_s18 + $0x54] sm:$0xf] }
 0x98c   :  { %1712 = vmatmul.msk.bf16.gmra.mxu0 %vm278_vm0, %v1002_v46  ;;  %1720 = vmatmul.msk.bf16.gmra.mxu1 %vm278_vm0, %v1002_v46 }
 0x98d   :  { %v987_v47 = vpop.f32.mrf.mxu2 }
 0x98e   :  { %v988_v48 = vadd.f32 %v1919_v14, %v987_v47  ;;  %v1725_v47 = vor.u32 %v1858_v42, %v1724_v41 }
 0x990   :  { %v998_v51 = vmax.f32 %v988_v48, 0.0  ;;  %v1749_v48 = vor.u32 %v1864_v44, %v1748_v43 }
 0x995   :  { %v989_v49 = vpop.f32.mrf.mxu2 }
 0x996   :  { %v990_v50 = vadd.f32 %v1919_v14, %v989_v49  ;;  %v1857_v14 = vld [vmem:[%s2825_s18 + $0x4] sm:$0xf] }
 0x997   :  { %v1729_v17 = vor.u32 %v1857_v14, %v1726_v15 }
 0x998   :  { %v999_v52 = vmax.f32 %v990_v50, 0.0  ;;  %v1732_v50 = vld [vmem:[%s2825_s18 + $0x10] sm:$0xf] }
 0x99a   :  { %v1003_v53 = vpack.c.bf16 %v999_v52, %v998_v51  ;;  %v1860_v51 = vld [vmem:[%s2825_s18 + $0x14] sm:$0xf0]  ;;  %v1756_v52 = vld [vmem:[%s2825_s18 + $0x40] sm:$0xf] }
 0x99c   :  { %1713 = vmatmul.msk.bf16.gmra.mxu0 %vm278_vm0, %v1003_v53  ;;  %1721 = vmatmul.msk.bf16.gmra.mxu1 %vm278_vm0, %v1003_v53 }
 0x9ac   :  { %1714 = vmatmul.msk.bf16.vlgmr.msrb.gmra.mxu0 %vm278_vm0, %v1000_v20  ;;  %v1859_v20 = vld [vmem:[%s2825_s18 + $0x14] sm:$0xf] }
 0x9ad   :  { %v1737_v22 = vor.u32 %v1859_v20, %v1734_v21 }
 0x9bc   :  { %1715 = vmatmul.msk.bf16.gmra.mxu0 %vm278_vm0, %v1001_v30  ;;  %v1863_v30 = vld [vmem:[%s2825_s18 + $0x34] sm:$0xf] }
 0x9bd   :  { %v1753_v32 = vor.u32 %v1863_v30, %v1750_v31 }
 0x9cc   :  { %1716 = vmatmul.msk.bf16.gmra.mxu0 %vm278_vm0, %v1002_v46  ;;  %v1766_v46 = vld [vmem:[%s2825_s18 + $0x58] sm:$0xf0] }
 0x9cd   :  { %v1769_v49 = vor.u32 %v1867_v45, %v1766_v46 }
 0x9dc   :  { %1717 = vmatmul.msk.bf16.gmra.mxu0 %vm278_vm0, %v1003_v53  ;;  %v1866_v53 = vld [vmem:[%s2825_s18 + $0x44] sm:$0xf0] }
 0x9e9   :  { %v1105_v54 = vpop.f32.mrf.mxu0  ;;  %v1163_v55 = vpop.f32.mrf.mxu1 }
 0x9f1   :  { %v1107_v56 = vpop.f32.mrf.mxu0  ;;  %v1165_v57 = vpop.f32.mrf.mxu1 }
 0x9f2   :  { %v2629_v58 = vpack.c.bf16 %v1107_v56, %v1105_v54  ;;  %v1207_v16 = vpack.c.bf16 %v1165_v57, %v1163_v55  ;;  %v1869_v54 = vld [vmem:[%s2825_s18 + $0x64] sm:$0xf]  ;;  %v1774_v55 = vld [vmem:[%s2825_s18 + $0x68] sm:$0xf0]  ;;  %v1733_v56 = vor.u32 %v1860_v51, %v1732_v50  ;;  %v1757_v57 = vor.u32 %v1866_v53, %v1756_v52 }
 0x9f9   :  { %v1110_v59 = vpop.f32.mrf.mxu0  ;;  %v1168_v60 = vpop.f32.mrf.mxu1 }
 0xa01   :  { %v1112_v61 = vpop.f32.mrf.mxu0  ;;  %v1170_v62 = vpop.f32.mrf.mxu1 }
 0xa02   :  { %v2631_v63 = vpack.c.bf16 %v1112_v61, %v1110_v59  ;;  %v1208_v13 = vpack.c.bf16 %v1170_v62, %v1168_v60  ;;  %v1740_v59 = vld [vmem:[%s2825_s18 + $0x20] sm:$0xf]  ;;  %v1862_v60 = vld [vmem:[%s2825_s18 + $0x24] sm:$0xf0]  ;;  %v1764_v61 = vld [vmem:[%s2825_s18 + $0x50] sm:$0xf] }
 0xa03   :  { %v1868_v62 = vld [vmem:[%s2825_s18 + $0x54] sm:$0xf0] }
 0xa09   :  { %v1115_v0 = vpop.f32.mrf.mxu0  ;;  %v1173_v1 = vpop.f32.mrf.mxu1 }
 0xa11   :  { %v1117_v2 = vpop.f32.mrf.mxu0  ;;  %v1175_v3 = vpop.f32.mrf.mxu1 }
 0xa12   :  { %v1201_v4 = vpack.c.bf16 %v1117_v2, %v1115_v0  ;;  %v1209_v11 = vpack.c.bf16 %v1175_v3, %v1173_v1  ;;  %v1782_v0 = vld [vmem:[%s2825_s18 + $0x78] sm:$0xf0]  ;;  %v1741_v1 = vor.u32 %v1862_v60, %v1740_v59  ;;  %v1765_v2 = vor.u32 %v1868_v62, %v1764_v61 }
 0xa19   :  { %v1120_v5 = vpop.f32.mrf.mxu0  ;;  %v1178_v6 = vpop.f32.mrf.mxu1 }
 0xa21   :  { %v1122_v7 = vpop.f32.mrf.mxu0  ;;  %v1180_v8 = vpop.f32.mrf.mxu1 }
 0xa22   :  { %v1202_v9 = vpack.c.bf16 %v1122_v7, %v1120_v5  ;;  %v1210_v10 = vpack.c.bf16 %v1180_v8, %v1178_v6  ;;  %v1870_v5 = vld [vmem:[%s2825_s18 + $0x64] sm:$0xf0]  ;;  %v1780_v8 = vld [vmem:[%s2825_s18 + $0x70] sm:$0xf] }
 0xa24   :  { %1364 = vmatpush.bf16.msra.mxu3 %v1210_v10 }
 0xa28   :  { %1365 = vmatpush.bf16.msra.mxu3 %v1209_v11 }
 0xa29   :  { %v1134_v12 = vpop.f32.mrf.mxu0 }
 0xa2c   :  { %1366 = vmatpush.bf16.msra.mxu3 %v1208_v13 }
 0xa30   :  { %1367 = vmatpush.bf16.msra.mxu3 %v1207_v16 }
 0xa31   :  { %v1136_v18 = vpop.f32.mrf.mxu0 }
 0xa32   :  { %v1203_v39 = vpack.c.bf16 %v1136_v18, %v1134_v12 }
 0xa33   :  { %1786 = vmatmul.msk.bf16.vlgmr.msra.gmra.mxu3 %vm278_vm0, %v1729_v17  ;;  %v2741_v17 = vld [vmem:[#allocation19] ss:$0 sm:$0xff] }
 0xa39   :  { %v1139_v19 = vpop.f32.mrf.mxu0 }
 0xa41   :  { %v1141_v23 = vpop.f32.mrf.mxu0 }
 0xa42   :  { %v1204_v36 = vpack.c.bf16 %v1141_v23, %v1139_v19 }
 0xa43   :  { %1787 = vmatmul.msk.bf16.gmra.mxu3 %vm278_vm0, %v1737_v22 }
 0xa49   :  { %v1144_v24 = vpop.f32.mrf.mxu0 }
 0xa51   :  { %v1146_v28 = vpop.f32.mrf.mxu0 }
 0xa52   :  { %v1205_v35 = vpack.c.bf16 %v1146_v28, %v1144_v24 }
 0xa53   :  { %1788 = vmatmul.msk.bf16.gmra.mxu3 %vm278_vm0, %v1745_v27 }
 0xa59   :  { %v1149_v29 = vpop.f32.mrf.mxu0 }
 0xa61   :  { %v1151_v33 = vpop.f32.mrf.mxu0 }
 0xa62   :  { %v1206_v34 = vpack.c.bf16 %v1151_v33, %v1149_v29 }
 0xa63   :  { %1789 = vmatmul.msk.bf16.gmra.mxu3 %vm278_vm0, %v1753_v32 }
 0xa64   :  { %1311 = vmatpush.bf16.msrb.mxu1 %v1206_v34  ;;  %1873 = vmatpush.bf16.msra.mxu2 %v1206_v34 }
 0xa68   :  { %1312 = vmatpush.bf16.msrb.mxu1 %v1205_v35  ;;  %1874 = vmatpush.bf16.msra.mxu2 %v1205_v35 }
 0xa6c   :  { %1313 = vmatpush.bf16.msrb.mxu1 %v1204_v36  ;;  %1875 = vmatpush.bf16.msra.mxu2 %v1204_v36 }
 0xa70   :  { %1314 = vmatpush.bf16.msrb.mxu1 %v1203_v39  ;;  %1876 = vmatpush.bf16.msra.mxu2 %v1203_v39 }
 0xa73   :  { %1790 = vmatmul.msk.bf16.gmra.mxu3 %vm278_vm0, %v1761_v40 }
 0xa74   :  { %1315 = vmatpush.bf16.msrb.mxu1 %v1202_v9  ;;  %1877 = vmatpush.bf16.msra.mxu2 %v1202_v9  ;;  %v1872_v9 = vld [vmem:[%s2825_s18 + $0x74] sm:$0xf0] }
 0xa75   :  { %v1781_v10 = vor.u32 %v1872_v9, %v1780_v8 }
 0xa78   :  { %1316 = vmatpush.bf16.msrb.mxu1 %v1201_v4  ;;  %1878 = vmatpush.bf16.msra.mxu2 %v1201_v4  ;;  %v1772_v4 = vld [vmem:[%s2825_s18 + $0x60] sm:$0xf] }
 0xa79   :  { %v1773_v6 = vor.u32 %v1870_v5, %v1772_v4 }
 0xa7c   :  { %1317 = vmatpush.bf16.msrb.mxu1 %v2631_v63  ;;  %1879 = vmatpush.bf16.msra.mxu2 %v2631_v63  ;;  %v1871_v63 = vld [vmem:[%s2825_s18 + $0x74] sm:$0xf] }
 0xa7d   :  { %v1785_v3 = vor.u32 %v1871_v63, %v1782_v0 }
 0xa80   :  { %1318 = vmatpush.bf16.msrb.mxu1 %v2629_v58  ;;  %1880 = vmatpush.bf16.msra.mxu2 %v2629_v58  ;;  %v1777_v58 = vor.u32 %v1869_v54, %v1774_v55 }
 0xa83   :  { %1319 = vmatmul.bf16.vlgmr.msrb.gmra.mxu1 %v1725_v47  ;;  %1334 = vmatmul.bf16.vlgmr.msra.gmra.mxu2 %v1749_v48 }
 0xa84   :  { %1791 = vmatmul.msk.bf16.gmra.mxu3 %vm278_vm0, %v1769_v49 }
 0xa93   :  { %1324 = vmatmul.bf16.gmra.mxu1 %v1733_v56  ;;  %1339 = vmatmul.bf16.gmra.mxu2 %v1757_v57 }
 0xa94   :  { %1792 = vmatmul.msk.bf16.gmra.mxu3 %vm278_vm0, %v1777_v58 }
 0xaa3   :  { %1329 = vmatmul.bf16.gmra.mxu1 %v1741_v1  ;;  %1344 = vmatmul.bf16.gmra.mxu2 %v1765_v2 }
 0xaa4   :  { %1793 = vmatmul.msk.bf16.gmra.mxu3 %vm278_vm0, %v1785_v3 }
 0xab3   :  { %1349 = vmatmul.bf16.gmra.mxu2 %v1773_v6 }
 0xab6   :  { %v1369_v7 = vpop.f32.mrf.mxu3 }
 0xabe   :  { %v1371_v11 = vpop.f32.mrf.mxu3 }
 0xac3   :  { %1354 = vmatmul.bf16.gmra.mxu2 %v1781_v10 }
 0xac6   :  { %v1374_v12 = vpop.f32.mrf.mxu3 }
 0xace   :  { %v1376_v13 = vpop.f32.mrf.mxu3 }
 0xad6   :  { %v1379_v14 = vpop.f32.mrf.mxu3 }
 0xade   :  { %v1381_v15 = vpop.f32.mrf.mxu3 }
 0xae6   :  { %v1384_v16 = vpop.f32.mrf.mxu3 }
 0xaee   :  { %v1386_v19 = vpop.f32.mrf.mxu3 }
 0xaf6   :  { %v1389_v27 = vpop.f32.mrf.mxu3 }
 0xafe   :  { %v1391_v35 = vpop.f32.mrf.mxu3 }
 0xb00   :  { %v1320_v18 = vpop.f32.mrf.mxu1 }
 0xb01   :  { %v1321_v20 = vadd.f32 %v2741_v17, %v1320_v18 }
 0xb03   :  { %v1370_v21 = vadd.f32 %v1369_v7, %v1321_v20 }
 0xb05   :  { %1409 = vst [vmem:[%s2828_s21] sm:$0xff] %v1370_v21 }
 0xb06   :  { %v1335_v22 = vpop.f32.mrf.mxu2 }
 0xb07   :  { %v1336_v23 = vadd.f32 %v2741_v17, %v1335_v22  ;;  %v1394_v43 = vpop.f32.mrf.mxu3 }
 0xb08   :  { %v1322_v24 = vpop.f32.mrf.mxu1 }
 0xb09   :  { %v1323_v25 = vadd.f32 %v2741_v17, %v1322_v24  ;;  %v1385_v26 = vadd.f32 %v1384_v16, %v1336_v23 }
 0xb0b   :  { %v1372_v28 = vadd.f32 %v1371_v11, %v1323_v25  ;;  %1415 = vst [vmem:[%s2828_s21 + $0x30] sm:$0xff] %v1385_v26 }
 0xb0d   :  { %1410 = vst [vmem:[%s2828_s21 + $0x8] sm:$0xff] %v1372_v28 }
 0xb0e   :  { %v1337_v29 = vpop.f32.mrf.mxu2 }
 0xb0f   :  { %v1338_v30 = vadd.f32 %v2741_v17, %v1337_v29  ;;  %v1396_v52 = vpop.f32.mrf.mxu3 }
 0xb10   :  { %v1325_v31 = vpop.f32.mrf.mxu1 }
 0xb11   :  { %v1326_v32 = vadd.f32 %v2741_v17, %v1325_v31  ;;  %v1387_v33 = vadd.f32 %v1386_v19, %v1338_v30 }
 0xb13   :  { %v1375_v34 = vadd.f32 %v1374_v12, %v1326_v32  ;;  %1416 = vst [vmem:[%s2828_s21 + $0x38] sm:$0xff] %v1387_v33 }
 0xb15   :  { %1411 = vst [vmem:[%s2828_s21 + $0x10] sm:$0xff] %v1375_v34 }
 0xb16   :  { %v1340_v36 = vpop.f32.mrf.mxu2 }
 0xb17   :  { %v1341_v37 = vadd.f32 %v2741_v17, %v1340_v36  ;;  %v1399_v59 = vpop.f32.mrf.mxu3 }
 0xb18   :  { %v1327_v38 = vpop.f32.mrf.mxu1 }
 0xb19   :  { %v1328_v39 = vadd.f32 %v2741_v17, %v1327_v38  ;;  %v1390_v40 = vadd.f32 %v1389_v27, %v1341_v37 }
 0xb1b   :  { %v1377_v41 = vadd.f32 %v1376_v13, %v1328_v39  ;;  %1417 = vst [vmem:[%s2828_s21 + $0x40] sm:$0xff] %v1390_v40 }
 0xb1d   :  { %1412 = vst [vmem:[%s2828_s21 + $0x18] sm:$0xff] %v1377_v41 }
 0xb1e   :  { %v1342_v42 = vpop.f32.mrf.mxu2 }
 0xb1f   :  { %v1343_v44 = vadd.f32 %v2741_v17, %v1342_v42  ;;  %v1401_v63 = vpop.f32.mrf.mxu3 }
 0xb20   :  { %v1330_v45 = vpop.f32.mrf.mxu1 }
 0xb21   :  { %v1331_v46 = vadd.f32 %v2741_v17, %v1330_v45  ;;  %v1392_v47 = vadd.f32 %v1391_v35, %v1343_v44 }
 0xb23   :  { %v1380_v48 = vadd.f32 %v1379_v14, %v1331_v46  ;;  %1418 = vst [vmem:[%s2828_s21 + $0x48] sm:$0xff] %v1392_v47 }
 0xb25   :  { %1413 = vst [vmem:[%s2828_s21 + $0x20] sm:$0xff] %v1380_v48 }
 0xb26   :  { %v1345_v49 = vpop.f32.mrf.mxu2 }
 0xb27   :  { %v1346_v50 = vadd.f32 %v2741_v17, %v1345_v49  ;;  %v1404_v4 = vpop.f32.mrf.mxu3 }
 0xb28   :  { %v1332_v51 = vpop.f32.mrf.mxu1 }
 0xb29   :  { %v1333_v53 = vadd.f32 %v2741_v17, %v1332_v51  ;;  %v1395_v54 = vadd.f32 %v1394_v43, %v1346_v50 }
 0xb2b   :  { %v1382_v55 = vadd.f32 %v1381_v15, %v1333_v53  ;;  %1419 = vst [vmem:[%s2828_s21 + $0x50] sm:$0xff] %v1395_v54 }
 0xb2d   :  { %1414 = vst [vmem:[%s2828_s21 + $0x28] sm:$0xff] %v1382_v55 }
 0xb2e   :  { %v1347_v56 = vpop.f32.mrf.mxu2 }
 0xb2f   :  { %v1348_v57 = vadd.f32 %v2741_v17, %v1347_v56  ;;  %v1406_v9 = vpop.f32.mrf.mxu3 }
 0xb31   :  { %v1397_v58 = vadd.f32 %v1396_v52, %v1348_v57 }
 0xb33   :  { %1420 = vst [vmem:[%s2828_s21 + $0x58] sm:$0xff] %v1397_v58 }
 0xb36   :  { %v1350_v60 = vpop.f32.mrf.mxu2 }
 0xb37   :  { %v1351_v61 = vadd.f32 %v2741_v17, %v1350_v60 }
 0xb39   :  { %v1400_v62 = vadd.f32 %v1399_v59, %v1351_v61 }
 0xb3b   :  { %1421 = vst [vmem:[%s2828_s21 + $0x60] sm:$0xff] %v1400_v62 }
 0xb3e   :  { %v1352_v0 = vpop.f32.mrf.mxu2 }
 0xb3f   :  { %v1353_v1 = vadd.f32 %v2741_v17, %v1352_v0 }
 0xb41   :  { %v1402_v2 = vadd.f32 %v1401_v63, %v1353_v1 }
 0xb43   :  { %1422 = vst [vmem:[%s2828_s21 + $0x68] sm:$0xff] %v1402_v2 }
 0xb46   :  { %v1355_v3 = vpop.f32.mrf.mxu2 }
 0xb47   :  { %v1356_v5 = vadd.f32 %v2741_v17, %v1355_v3 }
 0xb49   :  { %v1405_v6 = vadd.f32 %v1404_v4, %v1356_v5 }
 0xb4b   :  { %1423 = vst [vmem:[%s2828_s21 + $0x70] sm:$0xff] %v1405_v6 }
 0xb4e   :  { %v1357_v7 = vpop.f32.mrf.mxu2 }
 0xb4f   :  { %v1358_v8 = vadd.f32 %v2741_v17, %v1357_v7 }
 0xb51   :  { %v1407_v10 = vadd.f32 %v1406_v9, %v1358_v8 }
 0xb53   :  { %1424 = vst [vmem:[%s2828_s21 + $0x78] sm:$0xff] %v1407_v10 }
 0xb54   :  { %1429 = vsyncpa [#allocation3], 1 }
 0xb55   :  { %1430 = vsyncpa [#allocation5], 1 }
 0xb56   :  { %1431 = vsyncpa [#allocation8], 1 }
 0xb57   :  { %1432 = vsyncpa [#allocation11], 1 }
 0xb58   :  { %1433 = vsyncpa [#allocation14], 1 }
 0xb59   :  { %1434 = vsyncpa [#allocation17], 1 }
 0xb5a   :  { %1435 = vsyncpa [#allocation20], 1 }

</bundles_post_ra>
